<compile_context>
chip_gen: v6e
topology: v6e:2x2x1
jax: 0.10.0
libtpu: 0.0.40
codegen_flags: <defaults>
</compile_context>

<pallas_src>
import functools

import jax
import jax.numpy as jnp
from jax import lax
from jax.experimental import pallas as pl
from jax.experimental.pallas import tpu as pltpu

_LANE = 128


# ------------------------------ small helpers ------------------------------ #

def _round_up(x, m):
    return (x + m - 1) // m * m


def _pad_to(a, shape):
    return jnp.pad(a, [(0, t - s) for s, t in zip(a.shape, shape)])


_VMEM_LIMIT_CACHE = [None]


def _vmem_limit():
    """~3/4 of per-core VMEM: ~48 MiB on v7x (64 MiB), ~96 MiB on v5e/v6e."""
    if _VMEM_LIMIT_CACHE[0] is None:
        try:
            cap = int(pltpu.get_tpu_info().vmem_capacity_bytes)
        except Exception:
            cap = 64 * 1024 * 1024
        _VMEM_LIMIT_CACHE[0] = max(32 * 1024 * 1024,
                                   min(cap * 3 // 4, 96 * 1024 * 1024))
    return _VMEM_LIMIT_CACHE[0]


def _m_tiling(m):
    """Pick (tm, m_padded): tm a multiple of 128, >=2 grid steps when possible."""
    mp = _round_up(m, 128)
    if mp >= 1024:
        tm = 512
    elif mp >= 256:
        half = mp // 2
        tm = half if half % 128 == 0 else 256
    else:
        tm = mp
    return tm, _round_up(m, tm)


def _choose_tho(ho, wo):
    """Output-row block for the 3x3 conv (~256 flattened rows per block)."""
    target = 256
    cap = max(1, target // max(wo, 1))
    if cap >= ho:
        return ho
    for cand in range(min(cap, ho - 1), 0, -1):
        if ho % cand == 0 and (cand * wo) % 8 == 0:
            return cand
    return ho


# ----------------------------- Pallas kernels ------------------------------ #

def _mm_bn_kernel(x_ref, w_ref, s_ref, b_ref, o_ref, *, relu):
    """1x1 conv (matmul) + folded-BN affine (+ReLU).  Weight is resident."""
    y = jnp.dot(x_ref[...].astype(jnp.bfloat16), w_ref[...],
                preferred_element_type=jnp.float32)
    y = y * s_ref[...] + b_ref[...]
    if relu:
        y = jnp.maximum(y, 0.0)
    o_ref[...] = y.astype(o_ref.dtype)


def matmul_bn(x2d, w, scale, bias, *, relu, out_dtype):
    """x2d:(M,K) bf16, w:(K,N) bf16, scale/bias:(N,) f32 -> (M,N) out_dtype."""
    m, k = x2d.shape
    n = w.shape[1]
    tm, mp = _m_tiling(m)
    if mp != m:
        x2d = _pad_to(x2d, (mp, k))
    out = pl.pallas_call(
        functools.partial(_mm_bn_kernel, relu=relu),
        out_shape=jax.ShapeDtypeStruct((mp, n), out_dtype),
        grid_spec=pltpu.PrefetchScalarGridSpec(
            num_scalar_prefetch=0,
            grid=(mp // tm,),
            in_specs=[
                pl.BlockSpec((tm, k), lambda i: (i, 0)),
                pl.BlockSpec((k, n), lambda i: (0, 0)),      # resident weight
                pl.BlockSpec((1, n), lambda i: (0, 0)),
                pl.BlockSpec((1, n), lambda i: (0, 0)),
            ],
            out_specs=pl.BlockSpec((tm, n), lambda i: (i, 0)),
        ),
        compiler_params=pltpu.CompilerParams(
            dimension_semantics=("parallel",),
            vmem_limit_bytes=_vmem_limit()),
    )(x2d, w, scale.reshape(1, n), bias.reshape(1, n))
    return out if mp == m else out[:m]


def _conv3x3_bn_relu_kernel(xp_ref, w_ref, s_ref, b_ref, o_ref, *,
                            stride, tho, wo):
    """In-kernel im2col 3x3 conv + BN + ReLU for one (image, row-block).

    xp_ref : (s*s, Hq, Wq, Cp)   space-to-batch planes (whole padded image)
    w_ref  : (9, Cp, Cop)        resident per-tap weights
    o_ref  : (1, tho*wo, Cop)    one output row-block
    """
    s = stride
    halo = 2 // s
    cp = xp_ref.shape[-1]
    cop = o_ref.shape[-1]

    row0 = pl.program_id(1) * tho
    if tho % 8 == 0:
        row0 = pl.multiple_of(row0, 8)

    # Hoist the width-shifted slabs out of the 9-tap loop: the misaligned
    # minor-dim (W) slice copy happens 3*s times and is reused across kh.
    slabs = [[xp_ref[khm * s + (kw % s), pl.ds(row0, tho + halo),
                     (kw // s):(kw // s) + wo, :]
              for khm in range(s)]
             for kw in range(3)]

    acc = jnp.zeros((tho * wo, cop), jnp.float32)
    for kh in range(3):                      # unrolled 9-tap MXU accumulation
        for kw in range(3):
            oh = kh // s
            xt = slabs[kw][kh % s][oh:oh + tho]          # (tho, wo, cp)
            acc = acc + jnp.dot(xt.reshape(tho * wo, cp), w_ref[kh * 3 + kw],
                                preferred_element_type=jnp.float32)
    y = acc * s_ref[...] + b_ref[...]
    o_ref[0] = jnp.maximum(y, 0.0).astype(o_ref.dtype)


def conv3x3_bn_relu(x_nhwc, w9, scale, bias, *, stride, out_dtype):
    """3x3/stride conv (pad=1) + BN + ReLU.  x_nhwc:(N,H,W,Cp) bf16,
    w9:(9,Cp,Cop) bf16 -> (N, Ho*Wo, Cop)."""
    n, h, w, cp = x_nhwc.shape
    s = stride
    halo = 2 // s
    ho = (h - 1) // s + 1
    wo = (w - 1) // s + 1
    tho = _choose_tho(ho, wo)
    n_rb = ho // tho

    hq, wq = ho + halo, wo + halo            # plane extents actually needed
    hp_t, wp_t = hq * s, wq * s
    xp = jnp.pad(x_nhwc, ((0, 0), (1, hp_t - h - 1), (1, wp_t - w - 1), (0, 0)))
    if s == 1:
        planes = xp                          # identity: skip space-to-batch
    else:
        # plane (ph,pw)[qh,qw] == xp[qh*s+ph, qw*s+pw]  (1x data, no 9x blow-up)
        planes = xp.reshape(n, hq, s, wq, s, cp).transpose(0, 2, 4, 1, 3, 5)
        planes = planes.reshape(n * s * s, hq, wq, cp)

    cop = w9.shape[-1]
    return pl.pallas_call(
        functools.partial(_conv3x3_bn_relu_kernel, stride=s, tho=tho, wo=wo),
        out_shape=jax.ShapeDtypeStruct((n, ho * wo, cop), out_dtype),
        grid_spec=pltpu.PrefetchScalarGridSpec(
            num_scalar_prefetch=0,
            grid=(n, n_rb),
            in_specs=[
                pl.BlockSpec((s * s, hq, wq, cp), lambda i, r: (i, 0, 0, 0)),
                pl.BlockSpec((9, cp, cop), lambda i, r: (0, 0, 0)),   # resident
                pl.BlockSpec((1, cop), lambda i, r: (0, 0)),
                pl.BlockSpec((1, cop), lambda i, r: (0, 0)),
            ],
            out_specs=pl.BlockSpec((1, tho * wo, cop), lambda i, r: (i, r, 0)),
        ),
        compiler_params=pltpu.CompilerParams(
            dimension_semantics=("parallel", "parallel"),
            vmem_limit_bytes=_vmem_limit()),
    )(planes, w9, scale.reshape(1, cop), bias.reshape(1, cop))


def _mm_bn_ds_add_relu_kernel(x_ref, w_ref, s_ref, b_ref,
                              xd_ref, wd_ref, sd_ref, bd_ref, o_ref):
    """conv3(1x1)+BN fused with downsample(1x1)+BN, residual add, ReLU."""
    y = jnp.dot(x_ref[...], w_ref[...], preferred_element_type=jnp.float32)
    y = y * s_ref[...] + b_ref[...]
    r = jnp.dot(xd_ref[...].astype(jnp.bfloat16), wd_ref[...],
                preferred_element_type=jnp.float32)
    r = r * sd_ref[...] + bd_ref[...]
    o_ref[...] = jnp.maximum(y + r, 0.0).astype(o_ref.dtype)


def matmul_bn_downsample_add_relu(x2d, w, scale, bias,
                                  xd2d, wd, scale_d, bias_d, *, out_dtype):
    m, k = x2d.shape
    kd = xd2d.shape[1]
    n = w.shape[1]
    tm, mp = _m_tiling(m)
    if mp != m:
        x2d = _pad_to(x2d, (mp, k))
        xd2d = _pad_to(xd2d, (mp, kd))
    out = pl.pallas_call(
        _mm_bn_ds_add_relu_kernel,
        out_shape=jax.ShapeDtypeStruct((mp, n), out_dtype),
        grid_spec=pltpu.PrefetchScalarGridSpec(
            num_scalar_prefetch=0,
            grid=(mp // tm,),
            in_specs=[
                pl.BlockSpec((tm, k), lambda i: (i, 0)),
                pl.BlockSpec((k, n), lambda i: (0, 0)),       # resident
                pl.BlockSpec((1, n), lambda i: (0, 0)),
                pl.BlockSpec((1, n), lambda i: (0, 0)),
                pl.BlockSpec((tm, kd), lambda i: (i, 0)),
                pl.BlockSpec((kd, n), lambda i: (0, 0)),      # resident
                pl.BlockSpec((1, n), lambda i: (0, 0)),
                pl.BlockSpec((1, n), lambda i: (0, 0)),
            ],
            out_specs=pl.BlockSpec((tm, n), lambda i: (i, 0)),
        ),
        compiler_params=pltpu.CompilerParams(
            dimension_semantics=("parallel",),
            vmem_limit_bytes=_vmem_limit()),
    )(x2d, w, scale.reshape(1, n), bias.reshape(1, n),
      xd2d, wd, scale_d.reshape(1, n), bias_d.reshape(1, n))
    return out if mp == m else out[:m]


def _mm_bn_add_relu_kernel(x_ref, w_ref, s_ref, b_ref, r_ref, o_ref):
    """conv3(1x1)+BN + identity residual (kept f32) + ReLU."""
    y = jnp.dot(x_ref[...], w_ref[...], preferred_element_type=jnp.float32)
    y = y * s_ref[...] + b_ref[...] + r_ref[...].astype(jnp.float32)
    o_ref[...] = jnp.maximum(y, 0.0).astype(o_ref.dtype)


def matmul_bn_add_relu(x2d, w, scale, bias, res2d, *, out_dtype):
    m, k = x2d.shape
    n = w.shape[1]
    tm, mp = _m_tiling(m)
    if mp != m:
        x2d = _pad_to(x2d, (mp, k))
        res2d = _pad_to(res2d, (mp, n))
    out = pl.pallas_call(
        _mm_bn_add_relu_kernel,
        out_shape=jax.ShapeDtypeStruct((mp, n), out_dtype),
        grid_spec=pltpu.PrefetchScalarGridSpec(
            num_scalar_prefetch=0,
            grid=(mp // tm,),
            in_specs=[
                pl.BlockSpec((tm, k), lambda i: (i, 0)),
                pl.BlockSpec((k, n), lambda i: (0, 0)),       # resident
                pl.BlockSpec((1, n), lambda i: (0, 0)),
                pl.BlockSpec((1, n), lambda i: (0, 0)),
                pl.BlockSpec((tm, n), lambda i: (i, 0)),
            ],
            out_specs=pl.BlockSpec((tm, n), lambda i: (i, 0)),
        ),
        compiler_params=pltpu.CompilerParams(
            dimension_semantics=("parallel",),
            vmem_limit_bytes=_vmem_limit()),
    )(x2d, w, scale.reshape(1, n), bias.reshape(1, n), res2d)
    return out if mp == m else out[:m]


# ------------------------------- parameters -------------------------------- #

def _fold_bn(gamma, beta, mean, var, eps=1e-5):
    scale = gamma / jnp.sqrt(var + eps)
    bias = beta - mean * scale
    return scale, bias


def init_params(key, in_places, places, expansion):
    out_places = places * expansion
    keys = jax.random.split(key, 8)

    def conv_w(k, co, ci, kh, kw):
        fan_in = ci * kh * kw
        return jax.random.normal(k, (co, ci, kh, kw), jnp.float32) / jnp.sqrt(fan_in)

    def bn_p(k, c):
        k1, k2, k3 = jax.random.split(k, 3)
        gamma = 1.0 + 0.1 * jax.random.normal(k1, (c,), jnp.float32)
        beta = 0.1 * jax.random.normal(k2, (c,), jnp.float32)
        mean = 0.1 * jax.random.normal(k3, (c,), jnp.float32)
        var = 0.9 * jnp.ones((c,), jnp.float32)
        return (gamma, beta, mean, var)

    return dict(
        w1=conv_w(keys[0], places, in_places, 1, 1), bn1=bn_p(keys[1], places),
        w2=conv_w(keys[2], places, places, 3, 3), bn2=bn_p(keys[3], places),
        w3=conv_w(keys[4], out_places, places, 1, 1), bn3=bn_p(keys[5], out_places),
        wd=conv_w(keys[6], out_places, in_places, 1, 1), bnd=bn_p(keys[7], out_places),
    )


# ------------------------------ forward pass ------------------------------- #

def bottleneck_forward(x_nchw, params, stride=1, downsampling=False, expansion=4):
    # TODO(synk): accept/emit NHWC directly to drop these two host-boundary
    # transposes (and fold the channel pad into conv1) when the surrounding
    # model allows it.
    x = jnp.transpose(x_nchw, (0, 2, 3, 1)).astype(jnp.float32)
    n, h, w, cin = x.shape
    p = params["w1"].shape[0]
    cout = p * expansion
    if not downsampling:
        assert stride == 1 and cin == cout, (
            "identity residual requires stride==1 and in_places == places*expansion")

    cin_p = _round_up(cin, _LANE)
    p_p = _round_up(p, _LANE)
    cout_p = _round_up(cout, _LANE)

    s1, b1 = _fold_bn(*params["bn1"])
    s2, b2 = _fold_bn(*params["bn2"])
    s3, b3 = _fold_bn(*params["bn3"])

    # conv1: 1x1 + BN + ReLU  (weight-resident matmul, bf16 MXU, f32 acc)
    m1 = n * h * w
    x2d = _pad_to(x.reshape(m1, cin), (m1, cin_p)).astype(jnp.bfloat16)
    w1m = _pad_to(params["w1"].reshape(p, cin).T, (cin_p, p_p)).astype(jnp.bfloat16)
    y1 = matmul_bn(x2d, w1m, _pad_to(s1, (p_p,)), _pad_to(b1, (p_p,)),
                   relu=True, out_dtype=jnp.bfloat16)
    y1 = y1.reshape(n, h, w, p_p)

    # conv2: 3x3 stride=s pad=1 + BN + ReLU  (spatially-tiled in-kernel im2col)
    w2m = _pad_to(jnp.transpose(params["w2"], (2, 3, 1, 0)).reshape(9, p, p),
                  (9, p_p, p_p)).astype(jnp.bfloat16)
    y2 = conv3x3_bn_relu(y1, w2m, _pad_to(s2, (p_p,)), _pad_to(b2, (p_p,)),
                         stride=stride, out_dtype=jnp.bfloat16)
    ho = (h - 1) // stride + 1
    wo = (w - 1) // stride + 1
    m2 = n * ho * wo
    y2 = y2.reshape(m2, p_p)

    # conv3: 1x1 + BN + residual (fused downsample conv or identity) + ReLU
    w3m = _pad_to(params["w3"].reshape(cout, p).T, (p_p, cout_p)).astype(jnp.bfloat16)
    s3p, b3p = _pad_to(s3, (cout_p,)), _pad_to(b3, (cout_p,))
    if downsampling:
        sd, bd = _fold_bn(*params["bnd"])
        wdm = _pad_to(params["wd"].reshape(cout, cin).T,
                      (cin_p, cout_p)).astype(jnp.bfloat16)
        xd = x[:, ::stride, ::stride, :].reshape(m2, cin)
        xd = _pad_to(xd, (m2, cin_p)).astype(jnp.bfloat16)
        out2d = matmul_bn_downsample_add_relu(
            y2, w3m, s3p, b3p, xd, wdm,
            _pad_to(sd, (cout_p,)), _pad_to(bd, (cout_p,)),
            out_dtype=jnp.bfloat16)
    else:
        res = _pad_to(x.reshape(m2, cin), (m2, cout_p))     # f32 residual
        out2d = matmul_bn_add_relu(y2, w3m, s3p, b3p, res, out_dtype=jnp.bfloat16)

    # slice / reshape / NHWC->NCHW on bf16; single final cast to f32.
    out = out2d[:, :cout].reshape(n, ho, wo, cout)
    return jnp.transpose(out, (0, 3, 1, 2)).astype(jnp.float32)


# ------------------------- pure-JAX reference check ------------------------ #

def ref_forward(x, params, stride, downsampling):
    dn = ("NCHW", "OIHW", "NCHW")

    def conv(z, w, s, pad):
        return lax.conv_general_dilated(
            z, w, (s, s), [(pad, pad), (pad, pad)],
            dimension_numbers=dn, precision=lax.Precision.HIGHEST)

    def bn(y, prm):
        sc, bi = _fold_bn(*prm)
        return y * sc[None, :, None, None] + bi[None, :, None, None]

    y = jax.nn.relu(bn(conv(x, params["w1"], 1, 0), params["bn1"]))
    y = jax.nn.relu(bn(conv(y, params["w2"], stride, 1), params["bn2"]))
    y = bn(conv(y, params["w3"], 1, 0), params["bn3"])
    if downsampling:
        r = bn(conv(x, params["wd"], stride, 0), params["bnd"])
    else:
        r = x
    return jax.nn.relu(y + r)


if __name__ == "__main__":
    # Bottleneck(in_places=4, places=4, stride=2, downsampling=True,
    # expansion=4) on x of shape [2, 4, 16, 16] (PyTorch-consistent).
    N, in_places, H, W = 2, 4, 16, 16
    places, stride, expansion = 4, 2, 4
    downsampling = True

    key = jax.random.PRNGKey(0)
    kx, kp = jax.random.split(key)
    x = jax.random.normal(kx, (N, in_places, H, W), jnp.float32)
    params = init_params(kp, in_places, places, expansion)

    fwd = jax.jit(functools.partial(bottleneck_forward, stride=stride,
                                    downsampling=downsampling,
                                    expansion=expansion))
    out = jax.block_until_ready(fwd(x, params))

    ref = jax.block_until_ready(ref_forward(x, params, stride, downsampling))
    assert out.shape == (N, places * expansion, H // stride, W // stride), out.shape
    # bf16 MXU operands / bf16 kernel outputs with f32 accumulation vs f32 ref.
    assert bool(jnp.allclose(out, ref, atol=5e-2, rtol=5e-2)), "mismatch vs reference"
    print("KERNEL_OK")
</pallas_src>

<mosaic_0001>
module attributes {stable_mosaic.version = 11 : i64} {
  func.func @_mm_bn_kernel(%arg0: i32, %arg1: memref<256x128xbf16, #tpu.memory_space<vmem>>, %arg2: memref<128x128xbf16, #tpu.memory_space<vmem>>, %arg3: memref<1x128xf32, #tpu.memory_space<vmem>>, %arg4: memref<1x128xf32, #tpu.memory_space<vmem>>, %arg5: memref<256x128xbf16, #tpu.memory_space<vmem>>) attributes {dimension_semantics = [#tpu.dimension_semantics<parallel>], iteration_bounds = array<i64: 2>, scalar_prefetch = 0 : i64, scratch_operands = 0 : i64, tpu.core_type = #tpu.core_type<tc>, window_params = [{transform_indices = @transform_0, window_bounds = array<i64: 256, 128>}, {pipeline_mode = #tpu.pipeline_mode<synchronous>, transform_indices = @transform_1, window_bounds = array<i64: 128, 128>}, {pipeline_mode = #tpu.pipeline_mode<synchronous>, transform_indices = @transform_2, window_bounds = array<i64: 1, 128>}, {pipeline_mode = #tpu.pipeline_mode<synchronous>, transform_indices = @transform_3, window_bounds = array<i64: 1, 128>}, {transform_indices = @transform_4, window_bounds = array<i64: 256, 128>}]} {
    %c0 = arith.constant 0 : index
    %c0_0 = arith.constant 0 : index
    %0 = vector.load %arg1[%c0, %c0_0] : memref<256x128xbf16, #tpu.memory_space<vmem>>, vector<256x128xbf16>
    %c0_1 = arith.constant 0 : index
    %c0_2 = arith.constant 0 : index
    %1 = vector.load %arg2[%c0_1, %c0_2] : memref<128x128xbf16, #tpu.memory_space<vmem>>, vector<128x128xbf16>
    %cst = arith.constant dense<0.000000e+00> : vector<256x128xf32>
    %2 = tpu.matmul %0, %1, %cst {dimension_numbers = #tpu.dot_dimension_numbers<[1], [0], [0], [1], [0, 0, 1, 1], [], []>} : vector<256x128xbf16>, vector<128x128xbf16>, vector<256x128xf32> -> vector<256x128xf32>
    %c0_3 = arith.constant 0 : index
    %c0_4 = arith.constant 0 : index
    %3 = vector.load %arg3[%c0_3, %c0_4] : memref<1x128xf32, #tpu.memory_space<vmem>>, vector<1x128xf32>
    %4 = vector.broadcast %3 : vector<1x128xf32> to vector<256x128xf32>
    %5 = arith.mulf %2, %4 : vector<256x128xf32>
    %c0_5 = arith.constant 0 : index
    %c0_6 = arith.constant 0 : index
    %6 = vector.load %arg4[%c0_5, %c0_6] : memref<1x128xf32, #tpu.memory_space<vmem>>, vector<1x128xf32>
    %7 = vector.broadcast %6 : vector<1x128xf32> to vector<256x128xf32>
    %8 = arith.addf %5, %7 : vector<256x128xf32>
    %cst_7 = arith.constant 0.000000e+00 : f32
    %9 = vector.broadcast %cst_7 : f32 to vector<256x128xf32>
    %10 = arith.maximumf %8, %9 : vector<256x128xf32>
    %11 = arith.truncf %10 : vector<256x128xf32> to vector<256x128xbf16>
    %c0_8 = arith.constant 0 : index
    %c0_9 = arith.constant 0 : index
    %12 = vector.load %arg5[%c0_8, %c0_9] : memref<256x128xbf16, #tpu.memory_space<vmem>>, vector<256x128xbf16>
    tpu.vector_store %arg5[%c0_8, %c0_9], %11 {strides = array<i32>} : memref<256x128xbf16, #tpu.memory_space<vmem>>, vector<256x128xbf16>,
    return
  }
  func.func @transform_0(%arg0: i32) -> (i32, i32) {
    %c0_i32 = arith.constant 0 : i32
    %c0_i32_0 = arith.constant 0 : i32
    return %arg0, %c0_i32 : i32, i32
  }
  func.func @transform_1(%arg0: i32) -> (i32, i32) {
    %c0_i32 = arith.constant 0 : i32
    %c0_i32_0 = arith.constant 0 : i32
    %c0_i32_1 = arith.constant 0 : i32
    return %c0_i32, %c0_i32_0 : i32, i32
  }
  func.func @transform_2(%arg0: i32) -> (i32, i32) {
    %c0_i32 = arith.constant 0 : i32
    %c0_i32_0 = arith.constant 0 : i32
    %c0_i32_1 = arith.constant 0 : i32
    return %c0_i32, %c0_i32_0 : i32, i32
  }
  func.func @transform_3(%arg0: i32) -> (i32, i32) {
    %c0_i32 = arith.constant 0 : i32
    %c0_i32_0 = arith.constant 0 : i32
    %c0_i32_1 = arith.constant 0 : i32
    return %c0_i32, %c0_i32_0 : i32, i32
  }
  func.func @transform_4(%arg0: i32) -> (i32, i32) {
    %c0_i32 = arith.constant 0 : i32
    %c0_i32_0 = arith.constant 0 : i32
    return %arg0, %c0_i32 : i32, i32
  }
}

module attributes {stable_mosaic.version = 11 : i64} {
  func.func @_conv3x3_bn_relu_kernel(%arg0: i32, %arg1: i32, %arg2: memref<4x9x9x128xbf16, #tpu.memory_space<vmem>>, %arg3: memref<9x128x128xbf16, #tpu.memory_space<vmem>>, %arg4: memref<1x128xf32, #tpu.memory_space<vmem>>, %arg5: memref<1x128xf32, #tpu.memory_space<vmem>>, %arg6: memref<1x64x128xbf16, #tpu.memory_space<vmem>>) attributes {dimension_semantics = [#tpu.dimension_semantics<parallel>, #tpu.dimension_semantics<parallel>], iteration_bounds = array<i64: 2, 1>, scalar_prefetch = 0 : i64, scratch_operands = 0 : i64, tpu.core_type = #tpu.core_type<tc>, window_params = [{transform_indices = @transform_0, window_bounds = array<i64: 4, 9, 9, 128>}, {pipeline_mode = #tpu.pipeline_mode<synchronous>, transform_indices = @transform_1, window_bounds = array<i64: 9, 128, 128>}, {pipeline_mode = #tpu.pipeline_mode<synchronous>, transform_indices = @transform_2, window_bounds = array<i64: 1, 128>}, {pipeline_mode = #tpu.pipeline_mode<synchronous>, transform_indices = @transform_3, window_bounds = array<i64: 1, 128>}, {transform_indices = @transform_4, window_bounds = array<i64: 1, 64, 128>}]} {
    %c8_i32 = arith.constant 8 : i32
    %0 = arith.muli %arg1, %c8_i32 : i32
    %1 = tpu.assume_multiple %0, 8 : i32
    %c0 = arith.constant 0 : index
    %2 = arith.index_cast %1 : i32 to index
    %c0_0 = arith.constant 0 : index
    %c0_1 = arith.constant 0 : index
    %3 = vector.load %arg2[%c0, %2, %c0_0, %c0_1] : memref<4x9x9x128xbf16, #tpu.memory_space<vmem>>, vector<1x9x8x128xbf16>
    %4 = vector.shape_cast %3 : vector<1x9x8x128xbf16> to vector<9x8x128xbf16>
    %c2 = arith.constant 2 : index
    %5 = arith.index_cast %1 : i32 to index
    %c0_2 = arith.constant 0 : index
    %c0_3 = arith.constant 0 : index
    %6 = vector.load %arg2[%c2, %5, %c0_2, %c0_3] : memref<4x9x9x128xbf16, #tpu.memory_space<vmem>>, vector<1x9x8x128xbf16>
    %7 = vector.shape_cast %6 : vector<1x9x8x128xbf16> to vector<9x8x128xbf16>
    %c1 = arith.constant 1 : index
    %8 = arith.index_cast %1 : i32 to index
    %c0_4 = arith.constant 0 : index
    %c0_5 = arith.constant 0 : index
    %9 = vector.load %arg2[%c1, %8, %c0_4, %c0_5] : memref<4x9x9x128xbf16, #tpu.memory_space<vmem>>, vector<1x9x8x128xbf16>
    %10 = vector.shape_cast %9 : vector<1x9x8x128xbf16> to vector<9x8x128xbf16>
    %c3 = arith.constant 3 : index
    %11 = arith.index_cast %1 : i32 to index
    %c0_6 = arith.constant 0 : index
    %c0_7 = arith.constant 0 : index
    %12 = vector.load %arg2[%c3, %11, %c0_6, %c0_7] : memref<4x9x9x128xbf16, #tpu.memory_space<vmem>>, vector<1x9x8x128xbf16>
    %13 = vector.shape_cast %12 : vector<1x9x8x128xbf16> to vector<9x8x128xbf16>
    %c0_8 = arith.constant 0 : index
    %14 = arith.index_cast %1 : i32 to index
    %c1_9 = arith.constant 1 : index
    %c0_10 = arith.constant 0 : index
    %15 = vector.load %arg2[%c0_8, %14, %c1_9, %c0_10] : memref<4x9x9x128xbf16, #tpu.memory_space<vmem>>, vector<1x9x8x128xbf16>
    %16 = vector.shape_cast %15 : vector<1x9x8x128xbf16> to vector<9x8x128xbf16>
    %c2_11 = arith.constant 2 : index
    %17 = arith.index_cast %1 : i32 to index
    %c1_12 = arith.constant 1 : index
    %c0_13 = arith.constant 0 : index
    %18 = vector.load %arg2[%c2_11, %17, %c1_12, %c0_13] : memref<4x9x9x128xbf16, #tpu.memory_space<vmem>>, vector<1x9x8x128xbf16>
    %19 = vector.shape_cast %18 : vector<1x9x8x128xbf16> to vector<9x8x128xbf16>
    %cst = arith.constant 0.000000e+00 : f32
    %20 = vector.broadcast %cst : f32 to vector<64x128xf32>
    %21 = vector.extract_strided_slice %4 {offsets = [0, 0, 0], sizes = [8, 8, 128], strides = [1, 1, 1]} : vector<9x8x128xbf16> to vector<8x8x128xbf16>
    %22 = vector.shape_cast %21 : vector<8x8x128xbf16> to vector<64x128xbf16>
    %c0_14 = arith.constant 0 : index
    %c0_15 = arith.constant 0 : index
    %c0_16 = arith.constant 0 : index
    %23 = vector.load %arg3[%c0_14, %c0_15, %c0_16] : memref<9x128x128xbf16, #tpu.memory_space<vmem>>, vector<1x128x128xbf16>
    %24 = vector.shape_cast %23 : vector<1x128x128xbf16> to vector<128x128xbf16>
    %cst_17 = arith.constant dense<0.000000e+00> : vector<64x128xf32>
    %25 = tpu.matmul %22, %24, %cst_17 {dimension_numbers = #tpu.dot_dimension_numbers<[1], [0], [0], [1], [0, 0, 1, 1], [], []>} : vector<64x128xbf16>, vector<128x128xbf16>, vector<64x128xf32> -> vector<64x128xf32>
    %26 = arith.addf %20, %25 : vector<64x128xf32>
    %27 = vector.extract_strided_slice %10 {offsets = [0, 0, 0], sizes = [8, 8, 128], strides = [1, 1, 1]} : vector<9x8x128xbf16> to vector<8x8x128xbf16>
    %28 = vector.shape_cast %27 : vector<8x8x128xbf16> to vector<64x128xbf16>
    %c1_18 = arith.constant 1 : index
    %c0_19 = arith.constant 0 : index
    %c0_20 = arith.constant 0 : index
    %29 = vector.load %arg3[%c1_18, %c0_19, %c0_20] : memref<9x128x128xbf16, #tpu.memory_space<vmem>>, vector<1x128x128xbf16>
    %30 = vector.shape_cast %29 : vector<1x128x128xbf16> to vector<128x128xbf16>
    %cst_21 = arith.constant dense<0.000000e+00> : vector<64x128xf32>
    %31 = tpu.matmul %28, %30, %cst_21 {dimension_numbers = #tpu.dot_dimension_numbers<[1], [0], [0], [1], [0, 0, 1, 1], [], []>} : vector<64x128xbf16>, vector<128x128xbf16>, vector<64x128xf32> -> vector<64x128xf32>
    %32 = arith.addf %26, %31 : vector<64x128xf32>
    %33 = vector.extract_strided_slice %16 {offsets = [0, 0, 0], sizes = [8, 8, 128], strides = [1, 1, 1]} : vector<9x8x128xbf16> to vector<8x8x128xbf16>
    %34 = vector.shape_cast %33 : vector<8x8x128xbf16> to vector<64x128xbf16>
    %c2_22 = arith.constant 2 : index
    %c0_23 = arith.constant 0 : index
    %c0_24 = arith.constant 0 : index
    %35 = vector.load %arg3[%c2_22, %c0_23, %c0_24] : memref<9x128x128xbf16, #tpu.memory_space<vmem>>, vector<1x128x128xbf16>
    %36 = vector.shape_cast %35 : vector<1x128x128xbf16> to vector<128x128xbf16>
    %cst_25 = arith.constant dense<0.000000e+00> : vector<64x128xf32>
    %37 = tpu.matmul %34, %36, %cst_25 {dimension_numbers = #tpu.dot_dimension_numbers<[1], [0], [0], [1], [0, 0, 1, 1], [], []>} : vector<64x128xbf16>, vector<128x128xbf16>, vector<64x128xf32> -> vector<64x128xf32>
    %38 = arith.addf %32, %37 : vector<64x128xf32>
    %39 = vector.extract_strided_slice %7 {offsets = [0, 0, 0], sizes = [8, 8, 128], strides = [1, 1, 1]} : vector<9x8x128xbf16> to vector<8x8x128xbf16>
    %40 = vector.shape_cast %39 : vector<8x8x128xbf16> to vector<64x128xbf16>
    %c3_26 = arith.constant 3 : index
    %c0_27 = arith.constant 0 : index
    %c0_28 = arith.constant 0 : index
    %41 = vector.load %arg3[%c3_26, %c0_27, %c0_28] : memref<9x128x128xbf16, #tpu.memory_space<vmem>>, vector<1x128x128xbf16>
    %42 = vector.shape_cast %41 : vector<1x128x128xbf16> to vector<128x128xbf16>
    %cst_29 = arith.constant dense<0.000000e+00> : vector<64x128xf32>
    %43 = tpu.matmul %40, %42, %cst_29 {dimension_numbers = #tpu.dot_dimension_numbers<[1], [0], [0], [1], [0, 0, 1, 1], [], []>} : vector<64x128xbf16>, vector<128x128xbf16>, vector<64x128xf32> -> vector<64x128xf32>
    %44 = arith.addf %38, %43 : vector<64x128xf32>
    %45 = vector.extract_strided_slice %13 {offsets = [0, 0, 0], sizes = [8, 8, 128], strides = [1, 1, 1]} : vector<9x8x128xbf16> to vector<8x8x128xbf16>
    %46 = vector.shape_cast %45 : vector<8x8x128xbf16> to vector<64x128xbf16>
    %c4 = arith.constant 4 : index
    %c0_30 = arith.constant 0 : index
    %c0_31 = arith.constant 0 : index
    %47 = vector.load %arg3[%c4, %c0_30, %c0_31] : memref<9x128x128xbf16, #tpu.memory_space<vmem>>, vector<1x128x128xbf16>
    %48 = vector.shape_cast %47 : vector<1x128x128xbf16> to vector<128x128xbf16>
    %cst_32 = arith.constant dense<0.000000e+00> : vector<64x128xf32>
    %49 = tpu.matmul %46, %48, %cst_32 {dimension_numbers = #tpu.dot_dimension_numbers<[1], [0], [0], [1], [0, 0, 1, 1], [], []>} : vector<64x128xbf16>, vector<128x128xbf16>, vector<64x128xf32> -> vector<64x128xf32>
    %50 = arith.addf %44, %49 : vector<64x128xf32>
    %51 = vector.extract_strided_slice %19 {offsets = [0, 0, 0], sizes = [8, 8, 128], strides = [1, 1, 1]} : vector<9x8x128xbf16> to vector<8x8x128xbf16>
    %52 = vector.shape_cast %51 : vector<8x8x128xbf16> to vector<64x128xbf16>
    %c5 = arith.constant 5 : index
    %c0_33 = arith.constant 0 : index
    %c0_34 = arith.constant 0 : index
    %53 = vector.load %arg3[%c5, %c0_33, %c0_34] : memref<9x128x128xbf16, #tpu.memory_space<vmem>>, vector<1x128x128xbf16>
    %54 = vector.shape_cast %53 : vector<1x128x128xbf16> to vector<128x128xbf16>
    %cst_35 = arith.constant dense<0.000000e+00> : vector<64x128xf32>
    %55 = tpu.matmul %52, %54, %cst_35 {dimension_numbers = #tpu.dot_dimension_numbers<[1], [0], [0], [1], [0, 0, 1, 1], [], []>} : vector<64x128xbf16>, vector<128x128xbf16>, vector<64x128xf32> -> vector<64x128xf32>
    %56 = arith.addf %50, %55 : vector<64x128xf32>
    %57 = vector.extract_strided_slice %4 {offsets = [1, 0, 0], sizes = [8, 8, 128], strides = [1, 1, 1]} : vector<9x8x128xbf16> to vector<8x8x128xbf16>
    %58 = vector.shape_cast %57 : vector<8x8x128xbf16> to vector<64x128xbf16>
    %c6 = arith.constant 6 : index
    %c0_36 = arith.constant 0 : index
    %c0_37 = arith.constant 0 : index
    %59 = vector.load %arg3[%c6, %c0_36, %c0_37] : memref<9x128x128xbf16, #tpu.memory_space<vmem>>, vector<1x128x128xbf16>
    %60 = vector.shape_cast %59 : vector<1x128x128xbf16> to vector<128x128xbf16>
    %cst_38 = arith.constant dense<0.000000e+00> : vector<64x128xf32>
    %61 = tpu.matmul %58, %60, %cst_38 {dimension_numbers = #tpu.dot_dimension_numbers<[1], [0], [0], [1], [0, 0, 1, 1], [], []>} : vector<64x128xbf16>, vector<128x128xbf16>, vector<64x128xf32> -> vector<64x128xf32>
    %62 = arith.addf %56, %61 : vector<64x128xf32>
    %63 = vector.extract_strided_slice %10 {offsets = [1, 0, 0], sizes = [8, 8, 128], strides = [1, 1, 1]} : vector<9x8x128xbf16> to vector<8x8x128xbf16>
    %64 = vector.shape_cast %63 : vector<8x8x128xbf16> to vector<64x128xbf16>
    %c7 = arith.constant 7 : index
    %c0_39 = arith.constant 0 : index
    %c0_40 = arith.constant 0 : index
    %65 = vector.load %arg3[%c7, %c0_39, %c0_40] : memref<9x128x128xbf16, #tpu.memory_space<vmem>>, vector<1x128x128xbf16>
    %66 = vector.shape_cast %65 : vector<1x128x128xbf16> to vector<128x128xbf16>
    %cst_41 = arith.constant dense<0.000000e+00> : vector<64x128xf32>
    %67 = tpu.matmul %64, %66, %cst_41 {dimension_numbers = #tpu.dot_dimension_numbers<[1], [0], [0], [1], [0, 0, 1, 1], [], []>} : vector<64x128xbf16>, vector<128x128xbf16>, vector<64x128xf32> -> vector<64x128xf32>
    %68 = arith.addf %62, %67 : vector<64x128xf32>
    %69 = vector.extract_strided_slice %16 {offsets = [1, 0, 0], sizes = [8, 8, 128], strides = [1, 1, 1]} : vector<9x8x128xbf16> to vector<8x8x128xbf16>
    %70 = vector.shape_cast %69 : vector<8x8x128xbf16> to vector<64x128xbf16>
    %c8 = arith.constant 8 : index
    %c0_42 = arith.constant 0 : index
    %c0_43 = arith.constant 0 : index
    %71 = vector.load %arg3[%c8, %c0_42, %c0_43] : memref<9x128x128xbf16, #tpu.memory_space<vmem>>, vector<1x128x128xbf16>
    %72 = vector.shape_cast %71 : vector<1x128x128xbf16> to vector<128x128xbf16>
    %cst_44 = arith.constant dense<0.000000e+00> : vector<64x128xf32>
    %73 = tpu.matmul %70, %72, %cst_44 {dimension_numbers = #tpu.dot_dimension_numbers<[1], [0], [0], [1], [0, 0, 1, 1], [], []>} : vector<64x128xbf16>, vector<128x128xbf16>, vector<64x128xf32> -> vector<64x128xf32>
    %74 = arith.addf %68, %73 : vector<64x128xf32>
    %c0_45 = arith.constant 0 : index
    %c0_46 = arith.constant 0 : index
    %75 = vector.load %arg4[%c0_45, %c0_46] : memref<1x128xf32, #tpu.memory_space<vmem>>, vector<1x128xf32>
    %76 = vector.broadcast %75 : vector<1x128xf32> to vector<64x128xf32>
    %77 = arith.mulf %74, %76 : vector<64x128xf32>
    %c0_47 = arith.constant 0 : index
    %c0_48 = arith.constant 0 : index
    %78 = vector.load %arg5[%c0_47, %c0_48] : memref<1x128xf32, #tpu.memory_space<vmem>>, vector<1x128xf32>
    %79 = vector.broadcast %78 : vector<1x128xf32> to vector<64x128xf32>
    %80 = arith.addf %77, %79 : vector<64x128xf32>
    %cst_49 = arith.constant 0.000000e+00 : f32
    %81 = vector.broadcast %cst_49 : f32 to vector<64x128xf32>
    %82 = arith.maximumf %80, %81 : vector<64x128xf32>
    %83 = arith.truncf %82 : vector<64x128xf32> to vector<64x128xbf16>
    %c0_50 = arith.constant 0 : index
    %c0_51 = arith.constant 0 : index
    %c0_52 = arith.constant 0 : index
    %84 = vector.load %arg6[%c0_50, %c0_51, %c0_52] : memref<1x64x128xbf16, #tpu.memory_space<vmem>>, vector<1x64x128xbf16>
    %85 = vector.shape_cast %84 : vector<1x64x128xbf16> to vector<64x128xbf16>
    %86 = vector.shape_cast %83 : vector<64x128xbf16> to vector<1x64x128xbf16>
    tpu.vector_store %arg6[%c0_50, %c0_51, %c0_52], %86 {strides = array<i32>} : memref<1x64x128xbf16, #tpu.memory_space<vmem>>, vector<1x64x128xbf16>,
    return
  }
  func.func @transform_0(%arg0: i32, %arg1: i32) -> (i32, i32, i32, i32) {
    %c0_i32 = arith.constant 0 : i32
    %c0_i32_0 = arith.constant 0 : i32
    %c0_i32_1 = arith.constant 0 : i32
    %c0_i32_2 = arith.constant 0 : i32
    return %arg0, %c0_i32, %c0_i32_0, %c0_i32_1 : i32, i32, i32, i32
  }
  func.func @transform_1(%arg0: i32, %arg1: i32) -> (i32, i32, i32) {
    %c0_i32 = arith.constant 0 : i32
    %c0_i32_0 = arith.constant 0 : i32
    %c0_i32_1 = arith.constant 0 : i32
    %c0_i32_2 = arith.constant 0 : i32
    return %c0_i32, %c0_i32_0, %c0_i32_1 : i32, i32, i32
  }
  func.func @transform_2(%arg0: i32, %arg1: i32) -> (i32, i32) {
    %c0_i32 = arith.constant 0 : i32
    %c0_i32_0 = arith.constant 0 : i32
    %c0_i32_1 = arith.constant 0 : i32
    return %c0_i32, %c0_i32_0 : i32, i32
  }
  func.func @transform_3(%arg0: i32, %arg1: i32) -> (i32, i32) {
    %c0_i32 = arith.constant 0 : i32
    %c0_i32_0 = arith.constant 0 : i32
    %c0_i32_1 = arith.constant 0 : i32
    return %c0_i32, %c0_i32_0 : i32, i32
  }
  func.func @transform_4(%arg0: i32, %arg1: i32) -> (i32, i32, i32) {
    %c0_i32 = arith.constant 0 : i32
    %c0_i32_0 = arith.constant 0 : i32
    return %arg0, %arg1, %c0_i32 : i32, i32, i32
  }
}

module attributes {stable_mosaic.version = 11 : i64} {
  func.func @_mm_bn_ds_add_relu_kernel(%arg0: i32, %arg1: memref<128x128xbf16, #tpu.memory_space<vmem>>, %arg2: memref<128x128xbf16, #tpu.memory_space<vmem>>, %arg3: memref<1x128xf32, #tpu.memory_space<vmem>>, %arg4: memref<1x128xf32, #tpu.memory_space<vmem>>, %arg5: memref<128x128xbf16, #tpu.memory_space<vmem>>, %arg6: memref<128x128xbf16, #tpu.memory_space<vmem>>, %arg7: memref<1x128xf32, #tpu.memory_space<vmem>>, %arg8: memref<1x128xf32, #tpu.memory_space<vmem>>, %arg9: memref<128x128xbf16, #tpu.memory_space<vmem>>) attributes {dimension_semantics = [#tpu.dimension_semantics<parallel>], iteration_bounds = array<i64: 1>, scalar_prefetch = 0 : i64, scratch_operands = 0 : i64, tpu.core_type = #tpu.core_type<tc>, window_params = [{transform_indices = @transform_0, window_bounds = array<i64: 128, 128>}, {pipeline_mode = #tpu.pipeline_mode<synchronous>, transform_indices = @transform_1, window_bounds = array<i64: 128, 128>}, {pipeline_mode = #tpu.pipeline_mode<synchronous>, transform_indices = @transform_2, window_bounds = array<i64: 1, 128>}, {pipeline_mode = #tpu.pipeline_mode<synchronous>, transform_indices = @transform_3, window_bounds = array<i64: 1, 128>}, {transform_indices = @transform_4, window_bounds = array<i64: 128, 128>}, {pipeline_mode = #tpu.pipeline_mode<synchronous>, transform_indices = @transform_5, window_bounds = array<i64: 128, 128>}, {pipeline_mode = #tpu.pipeline_mode<synchronous>, transform_indices = @transform_6, window_bounds = array<i64: 1, 128>}, {pipeline_mode = #tpu.pipeline_mode<synchronous>, transform_indices = @transform_7, window_bounds = array<i64: 1, 128>}, {transform_indices = @transform_8, window_bounds = array<i64: 128, 128>}]} {
    %c0 = arith.constant 0 : index
    %c0_0 = arith.constant 0 : index
    %0 = vector.load %arg1[%c0, %c0_0] : memref<128x128xbf16, #tpu.memory_space<vmem>>, vector<128x128xbf16>
    %c0_1 = arith.constant 0 : index
    %c0_2 = arith.constant 0 : index
    %1 = vector.load %arg2[%c0_1, %c0_2] : memref<128x128xbf16, #tpu.memory_space<vmem>>, vector<128x128xbf16>
    %cst = arith.constant dense<0.000000e+00> : vector<128x128xf32>
    %2 = tpu.matmul %0, %1, %cst {dimension_numbers = #tpu.dot_dimension_numbers<[1], [0], [0], [1], [0, 0, 1, 1], [], []>} : vector<128x128xbf16>, vector<128x128xbf16>, vector<128x128xf32> -> vector<128x128xf32>
    %c0_3 = arith.constant 0 : index
    %c0_4 = arith.constant 0 : index
    %3 = vector.load %arg3[%c0_3, %c0_4] : memref<1x128xf32, #tpu.memory_space<vmem>>, vector<1x128xf32>
    %4 = vector.broadcast %3 : vector<1x128xf32> to vector<128x128xf32>
    %5 = arith.mulf %2, %4 : vector<128x128xf32>
    %c0_5 = arith.constant 0 : index
    %c0_6 = arith.constant 0 : index
    %6 = vector.load %arg4[%c0_5, %c0_6] : memref<1x128xf32, #tpu.memory_space<vmem>>, vector<1x128xf32>
    %7 = vector.broadcast %6 : vector<1x128xf32> to vector<128x128xf32>
    %8 = arith.addf %5, %7 : vector<128x128xf32>
    %c0_7 = arith.constant 0 : index
    %c0_8 = arith.constant 0 : index
    %9 = vector.load %arg5[%c0_7, %c0_8] : memref<128x128xbf16, #tpu.memory_space<vmem>>, vector<128x128xbf16>
    %c0_9 = arith.constant 0 : index
    %c0_10 = arith.constant 0 : index
    %10 = vector.load %arg6[%c0_9, %c0_10] : memref<128x128xbf16, #tpu.memory_space<vmem>>, vector<128x128xbf16>
    %cst_11 = arith.constant dense<0.000000e+00> : vector<128x128xf32>
    %11 = tpu.matmul %9, %10, %cst_11 {dimension_numbers = #tpu.dot_dimension_numbers<[1], [0], [0], [1], [0, 0, 1, 1], [], []>} : vector<128x128xbf16>, vector<128x128xbf16>, vector<128x128xf32> -> vector<128x128xf32>
    %c0_12 = arith.constant 0 : index
    %c0_13 = arith.constant 0 : index
    %12 = vector.load %arg7[%c0_12, %c0_13] : memref<1x128xf32, #tpu.memory_space<vmem>>, vector<1x128xf32>
    %13 = vector.broadcast %12 : vector<1x128xf32> to vector<128x128xf32>
    %14 = arith.mulf %11, %13 : vector<128x128xf32>
    %c0_14 = arith.constant 0 : index
    %c0_15 = arith.constant 0 : index
    %15 = vector.load %arg8[%c0_14, %c0_15] : memref<1x128xf32, #tpu.memory_space<vmem>>, vector<1x128xf32>
    %16 = vector.broadcast %15 : vector<1x128xf32> to vector<128x128xf32>
    %17 = arith.addf %14, %16 : vector<128x128xf32>
    %18 = arith.addf %8, %17 : vector<128x128xf32>
    %cst_16 = arith.constant 0.000000e+00 : f32
    %19 = vector.broadcast %cst_16 : f32 to vector<128x128xf32>
    %20 = arith.maximumf %18, %19 : vector<128x128xf32>
    %21 = arith.truncf %20 : vector<128x128xf32> to vector<128x128xbf16>
    %c0_17 = arith.constant 0 : index
    %c0_18 = arith.constant 0 : index
    %22 = vector.load %arg9[%c0_17, %c0_18] : memref<128x128xbf16, #tpu.memory_space<vmem>>, vector<128x128xbf16>
    tpu.vector_store %arg9[%c0_17, %c0_18], %21 {strides = array<i32>} : memref<128x128xbf16, #tpu.memory_space<vmem>>, vector<128x128xbf16>,
    return
  }
  func.func @transform_0(%arg0: i32) -> (i32, i32) {
    %c0_i32 = arith.constant 0 : i32
    %c0_i32_0 = arith.constant 0 : i32
    return %arg0, %c0_i32 : i32, i32
  }
  func.func @transform_1(%arg0: i32) -> (i32, i32) {
    %c0_i32 = arith.constant 0 : i32
    %c0_i32_0 = arith.constant 0 : i32
    %c0_i32_1 = arith.constant 0 : i32
    return %c0_i32, %c0_i32_0 : i32, i32
  }
  func.func @transform_2(%arg0: i32) -> (i32, i32) {
    %c0_i32 = arith.constant 0 : i32
    %c0_i32_0 = arith.constant 0 : i32
    %c0_i32_1 = arith.constant 0 : i32
    return %c0_i32, %c0_i32_0 : i32, i32
  }
  func.func @transform_3(%arg0: i32) -> (i32, i32) {
    %c0_i32 = arith.constant 0 : i32
    %c0_i32_0 = arith.constant 0 : i32
    %c0_i32_1 = arith.constant 0 : i32
    return %c0_i32, %c0_i32_0 : i32, i32
  }
  func.func @transform_4(%arg0: i32) -> (i32, i32) {
    %c0_i32 = arith.constant 0 : i32
    %c0_i32_0 = arith.constant 0 : i32
    return %arg0, %c0_i32 : i32, i32
  }
  func.func @transform_5(%arg0: i32) -> (i32, i32) {
    %c0_i32 = arith.constant 0 : i32
    %c0_i32_0 = arith.constant 0 : i32
    %c0_i32_1 = arith.constant 0 : i32
    return %c0_i32, %c0_i32_0 : i32, i32
  }
  func.func @transform_6(%arg0: i32) -> (i32, i32) {
    %c0_i32 = arith.constant 0 : i32
    %c0_i32_0 = arith.constant 0 : i32
    %c0_i32_1 = arith.constant 0 : i32
    return %c0_i32, %c0_i32_0 : i32, i32
  }
  func.func @transform_7(%arg0: i32) -> (i32, i32) {
    %c0_i32 = arith.constant 0 : i32
    %c0_i32_0 = arith.constant 0 : i32
    %c0_i32_1 = arith.constant 0 : i32
    return %c0_i32, %c0_i32_0 : i32, i32
  }
  func.func @transform_8(%arg0: i32) -> (i32, i32) {
    %c0_i32 = arith.constant 0 : i32
    %c0_i32_0 = arith.constant 0 : i32
    return %arg0, %c0_i32 : i32, i32
  }
}

</mosaic_0001>

<bundles_post_ra>
// kernel: bottleneck_forward.3
= control target key start
LH: loop header
LB: loop body
LE: loop exit
PB: predicated region body
PF: predicated region fallthrough
CT: control target
= control target key end

     0   :  { %s1230_s15 = smov 0   ;;  %s1388_s0 = inlined_call_operand.vmem [shape: bf16[512,128], index: 0, kind: input, shape index: {}]   ;;  %s1389_s1 = inlined_call_operand.vmem [shape: bf16[128,128], index: 1, kind: input, shape index: {}]   ;;  %s1390_s2 = inlined_call_operand.vmem [shape: f32[1,128], index: 2, kind: input, shape index: {}]   ;;  %s1391_s3 = inlined_call_operand.vmem [shape: f32[1,128], index: 3, kind: input, shape index: {}]   ;;  %s1392_s4 = inlined_call_operand.vmem [shape: bf16[512,128], index: 4, kind: output, shape index: {}]  }
   0x1 LB: > { %s881_s16 = sadd.s32 4294967295, %s1203_s15   ;;  %p885_p0 = scmp.ge.s32.totalorder %s1203_s15, 1  ;;  %s1203_s15 = sphi %s1230_s15, %s14_s15  }
   0x2   : > { %p163_p1 = scmp.lt.s32.totalorder %s1203_s15, 3 }
   0x4   : > { %p164_p2 = pnand %p885_p0, %p163_p1 }
   0x5   : > { %s886_s19 = sshll.u32 (!%p164_p2), %s881_s16, 5 }
   0x6   : > { %167 = sbr.rel (%p164_p2) target bundleno = 276 (0x114), region = 36  ;;  %p190_p3 = scmp.lt.s32.totalorder (!%p164_p2), %s886_s19, 63 }
   0xb   : > { %v1173_v0 = vld [vmem:[%s1389_s1 + $0x38] sm:$0xff]   ;;  %v1174_v1 = vld [vmem:[%s1389_s1 + $0x30] sm:$0xff]   ;;  %s1394_s19 = smov (!%p190_p3, %s886_s19), 63  ;;  %v1175_v2 = vld [vmem:[%s1389_s1 + $0x28] sm:$0xff]  }
   0xc   : > { %1101 = vmatprep.subr.bf16.mxu0 %v1173_v0  ;;  %1149 = vmatprep.subr.bf16.mxu1 %v1173_v0  ;;  %s887_s24 = sshll.u32 %s1394_s19, 2  ;;  %v1176_v3 = vld [vmem:[%s1389_s1 + $0x20] sm:$0xff]   ;;  %v1177_v6 = vld [vmem:[%s1389_s1 + $0x18] sm:$0xff]   ;;  %v1178_v7 = vld [vmem:[%s1389_s1 + $0x10] sm:$0xff]  }
   0xd   : > { %1102 = vmatpush3.bf16.msra.mxu0 %v1173_v0  ;;  %1157 = vmatpush3.bf16.msra.mxu1 %v1173_v0  ;;  %s1255_s27 = scalar_lea.vmem %s1388_s0, %s887_s24  ;;  %v1179_v8 = vld [vmem:[%s1389_s1 + $0x8] sm:$0xff]   ;;  %v1180_v9 = vld [vmem:[%s1389_s1] sm:$0xff]   ;;  %s1321_s20 = scalar_lea.vmem %s1392_s4, %s887_s24 }
   0xe   : > { %1103 = vmatprep.subr.bf16.mxu0 %v1174_v1  ;;  %1150 = vmatprep.subr.bf16.mxu1 %v1174_v1  ;;  %v1181_v4 = vld [vmem:[%s1255_s27] sm:$0xff]   ;;  %v1183_v10 = vld [vmem:[%s1255_s27 + $0x8] sm:$0xff]   ;;  %v1185_v12 = vld [vmem:[%s1255_s27 + $0x10] sm:$0xff]  }
   0xf   : > { %v1182_v5 = vld [vmem:[%s1255_s27 + $0x40] sm:$0xff]   ;;  %1117 = vmatprep.mubr.bf16.mxu0 %v1181_v4  ;;  %v1184_v11 = vld [vmem:[%s1255_s27 + $0x48] sm:$0xff]   ;;  %v1186_v13 = vld [vmem:[%s1255_s27 + $0x50] sm:$0xff]  }
  0x10   : > { %1133 = vmatprep.mubr.bf16.mxu1 %v1182_v5  ;;  %v1187_v14 = vld [vmem:[%s1255_s27 + $0x18] sm:$0xff]   ;;  %v1189_v16 = vld [vmem:[%s1255_s27 + $0x20] sm:$0xff]   ;;  %v1191_v18 = vld [vmem:[%s1255_s27 + $0x28] sm:$0xff]  }
  0x11   : > { %1104 = vmatpush3.bf16.msra.mxu0 %v1174_v1  ;;  %1158 = vmatpush3.bf16.msra.mxu1 %v1174_v1  ;;  %v1188_v15 = vld [vmem:[%s1255_s27 + $0x58] sm:$0xff]   ;;  %v1190_v17 = vld [vmem:[%s1255_s27 + $0x60] sm:$0xff]   ;;  %v1192_v19 = vld [vmem:[%s1255_s27 + $0x68] sm:$0xff]  }
  0x12   : > { %1105 = vmatprep.subr.bf16.mxu0 %v1175_v2  ;;  %1151 = vmatprep.subr.bf16.mxu1 %v1175_v2  ;;  %v1193_v20 = vld [vmem:[%s1255_s27 + $0x30] sm:$0xff]   ;;  %v1195_v22 = vld [vmem:[%s1255_s27 + $0x38] sm:$0xff]   ;;  %v1291_v24 = vld [vmem:[%s1390_s2] ss:$0 sm:$0xff] }
  0x13   : > { %v1194_v21 = vld [vmem:[%s1255_s27 + $0x70] sm:$0xff]   ;;  %v1196_v23 = vld [vmem:[%s1255_s27 + $0x78] sm:$0xff]   ;;  %v1298_v29 = vld [vmem:[%s1391_s3] ss:$0 sm:$0xff] }
  0x15   : > { %1106 = vmatpush3.bf16.msra.mxu0 %v1175_v2  ;;  %1159 = vmatpush3.bf16.msra.mxu1 %v1175_v2 }
  0x16   : > { %1107 = vmatprep.subr.bf16.mxu0 %v1176_v3  ;;  %1152 = vmatprep.subr.bf16.mxu1 %v1176_v3 }
  0x19   : > { %1108 = vmatpush3.bf16.msra.mxu0 %v1176_v3  ;;  %1160 = vmatpush3.bf16.msra.mxu1 %v1176_v3 }
  0x1a   : > { %1109 = vmatprep.subr.bf16.mxu0 %v1177_v6  ;;  %1153 = vmatprep.subr.bf16.mxu1 %v1177_v6 }
  0x1d   : > { %1110 = vmatpush3.bf16.msra.mxu0 %v1177_v6  ;;  %1161 = vmatpush3.bf16.msra.mxu1 %v1177_v6 }
  0x1e   : > { %1111 = vmatprep.subr.bf16.mxu0 %v1178_v7  ;;  %1154 = vmatprep.subr.bf16.mxu1 %v1178_v7 }
  0x21   : > { %1112 = vmatpush3.bf16.msra.mxu0 %v1178_v7  ;;  %1162 = vmatpush3.bf16.msra.mxu1 %v1178_v7 }
  0x22   : > { %1113 = vmatprep.subr.bf16.mxu0 %v1179_v8  ;;  %1155 = vmatprep.subr.bf16.mxu1 %v1179_v8 }
  0x25   : > { %1114 = vmatpush3.bf16.msra.mxu0 %v1179_v8  ;;  %1163 = vmatpush3.bf16.msra.mxu1 %v1179_v8 }
  0x26   : > { %1115 = vmatprep.subr.bf16.mxu0 %v1180_v9  ;;  %1156 = vmatprep.subr.bf16.mxu1 %v1180_v9 }
  0x29   : > { %1116 = vmatpush3.bf16.msra.mxu0 %v1180_v9  ;;  %1164 = vmatpush3.bf16.msra.mxu1 %v1180_v9 }
  0x2c   : > { %1118 = vmatmul.mubr.bf16.vlgmr.msra.gmra.mxu0 %v1183_v10  ;;  %1134 = vmatmul.mubr.bf16.vlgmr.msra.gmra.mxu1 %v1184_v11 }
  0x2d   : > { %1121 = vmatprep.mubr.bf16.mxu0 %v1185_v12  ;;  %1137 = vmatprep.mubr.bf16.mxu1 %v1186_v13 }
  0x34   : > { %1122 = vmatmul.mubr.bf16.gmra.mxu0 %v1187_v14  ;;  %1138 = vmatmul.mubr.bf16.gmra.mxu1 %v1188_v15 }
  0x35   : > { %1125 = vmatprep.mubr.bf16.mxu0 %v1189_v16  ;;  %1141 = vmatprep.mubr.bf16.mxu1 %v1190_v17 }
  0x3c   : > { %1126 = vmatmul.mubr.bf16.gmra.mxu0 %v1191_v18  ;;  %1142 = vmatmul.mubr.bf16.gmra.mxu1 %v1192_v19 }
  0x3d   : > { %1129 = vmatprep.mubr.bf16.mxu0 %v1193_v20  ;;  %1145 = vmatprep.mubr.bf16.mxu1 %v1194_v21 }
  0x44   : > { %1130 = vmatmul.mubr.bf16.gmra.mxu0 %v1195_v22  ;;  %1146 = vmatmul.mubr.bf16.gmra.mxu1 %v1196_v23 }
  0xec   : > { %v1119_v25 = vpop.f32.mrf.mxu0  ;;  %v1135_v26 = vpop.f32.mrf.mxu1 }
  0xed   : > { %v564_v27 = vmul.f32 %v1119_v25, %v1291_v24  ;;  %v580_v28 = vmul.f32 %v1135_v26, %v1291_v24 }
  0xee   : > { %v428_v30 = vpop.f32.mrf.mxu0  ;;  %v492_v31 = vpop.f32.mrf.mxu1 }
  0xef   : > { %v562_v32 = vmul.f32 %v1291_v24, %v428_v30  ;;  %v578_v33 = vmul.f32 %v1291_v24, %v492_v31  ;;  %v603_v36 = vadd.f32 %v1298_v29, %v564_v27  ;;  %v619_v37 = vadd.f32 %v1298_v29, %v580_v28 }
  0xf0   : > { %v1120_v34 = vpop.f32.mrf.mxu0  ;;  %v1136_v35 = vpop.f32.mrf.mxu1 }
  0xf1   : > { %v565_v38 = vmul.f32 %v1120_v34, %v1291_v24  ;;  %v581_v39 = vmul.f32 %v1136_v35, %v1291_v24  ;;  %v601_v42 = vadd.f32 %v1298_v29, %v562_v32  ;;  %v617_v43 = vadd.f32 %v1298_v29, %v578_v33 }
  0xf2   : > { %v431_v40 = vpop.f32.mrf.mxu0  ;;  %v495_v41 = vpop.f32.mrf.mxu1  ;;  %v635_v50 = vmax.f32 %v603_v36, 0.0  ;;  %v651_v51 = vmax.f32 %v619_v37, 0.0 }
  0xf3   : > { %v563_v44 = vmul.f32 %v1291_v24, %v431_v40  ;;  %v579_v45 = vmul.f32 %v1291_v24, %v495_v41  ;;  %v604_v46 = vadd.f32 %v1298_v29, %v565_v38  ;;  %v620_v47 = vadd.f32 %v1298_v29, %v581_v39 }
  0xf4   : > { %v1123_v48 = vpop.f32.mrf.mxu0  ;;  %v1139_v49 = vpop.f32.mrf.mxu1  ;;  %v633_v60 = vmax.f32 %v601_v42, 0.0  ;;  %v649_v61 = vmax.f32 %v617_v43, 0.0 }
  0xf5   : > { %v602_v52 = vadd.f32 %v1298_v29, %v563_v44  ;;  %v618_v53 = vadd.f32 %v1298_v29, %v579_v45  ;;  %v636_v54 = vmax.f32 %v604_v46, 0.0  ;;  %v652_v55 = vmax.f32 %v620_v47, 0.0 }
  0xf6   : > { %v568_v56 = vmul.f32 %v1123_v48, %v1291_v24  ;;  %v584_v57 = vmul.f32 %v1139_v49, %v1291_v24  ;;  %v444_v58 = vpop.f32.mrf.mxu0  ;;  %v508_v59 = vpop.f32.mrf.mxu1 }
  0xf7   : > { %v634_v62 = vmax.f32 %v602_v52, 0.0  ;;  %v650_v63 = vmax.f32 %v618_v53, 0.0  ;;  %v990_v0 = vpack.c.bf16 %v636_v54, %v635_v50  ;;  %v1030_v1 = vpack.c.bf16 %v652_v55, %v651_v51 }
  0xf8   : > { %v566_v2 = vmul.f32 %v1291_v24, %v444_v58  ;;  %v582_v3 = vmul.f32 %v1291_v24, %v508_v59  ;;  %v1124_v4 = vpop.f32.mrf.mxu0  ;;  %v1140_v5 = vpop.f32.mrf.mxu1  ;;  %v607_v8 = vadd.f32 %v1298_v29, %v568_v56  ;;  %v623_v9 = vadd.f32 %v1298_v29, %v584_v57 }
  0xf9   : > { %v985_v6 = vpack.c.bf16 %v634_v62, %v633_v60  ;;  %v1025_v7 = vpack.c.bf16 %v650_v63, %v649_v61  ;;  %1062 = vst [vmem:[%s1321_s20 + $0x8] sm:$0xff] %v990_v0   ;;  %1070 = vst [vmem:[%s1321_s20 + $0x48] sm:$0xff] %v1030_v1   ;;  %v569_v10 = vmul.f32 %v1124_v4, %v1291_v24 }
  0xfa   : > { %v585_v11 = vmul.f32 %v1140_v5, %v1291_v24  ;;  %v447_v12 = vpop.f32.mrf.mxu0  ;;  %v511_v13 = vpop.f32.mrf.mxu1  ;;  %v605_v14 = vadd.f32 %v1298_v29, %v566_v2  ;;  %v621_v15 = vadd.f32 %v1298_v29, %v582_v3  ;;  %v639_v27 = vmax.f32 %v607_v8, 0.0 }
  0xfb   : > { %986 = vst [vmem:[%s1321_s20] sm:$0xff] %v985_v6   ;;  %1069 = vst [vmem:[%s1321_s20 + $0x40] sm:$0xff] %v1025_v7   ;;  %v567_v16 = vmul.f32 %v1291_v24, %v447_v12  ;;  %v583_v17 = vmul.f32 %v1291_v24, %v511_v13  ;;  %v608_v18 = vadd.f32 %v1298_v29, %v569_v10  ;;  %v655_v28 = vmax.f32 %v623_v9, 0.0 }
  0xfc   : > { %v624_v19 = vadd.f32 %v1298_v29, %v585_v11  ;;  %v1127_v20 = vpop.f32.mrf.mxu0  ;;  %v1143_v21 = vpop.f32.mrf.mxu1  ;;  %v637_v34 = vmax.f32 %v605_v14, 0.0  ;;  %v653_v35 = vmax.f32 %v621_v15, 0.0 }
  0xfd   : > { %v606_v22 = vadd.f32 %v1298_v29, %v567_v16  ;;  %v622_v23 = vadd.f32 %v1298_v29, %v583_v17  ;;  %v572_v25 = vmul.f32 %v1127_v20, %v1291_v24  ;;  %v588_v26 = vmul.f32 %v1143_v21, %v1291_v24 }
  0xfe   : > { %v640_v30 = vmax.f32 %v608_v18, 0.0  ;;  %v656_v31 = vmax.f32 %v624_v19, 0.0  ;;  %v460_v32 = vpop.f32.mrf.mxu0  ;;  %v524_v33 = vpop.f32.mrf.mxu1 }
  0xff   : > { %v638_v36 = vmax.f32 %v606_v22, 0.0  ;;  %v654_v37 = vmax.f32 %v622_v23, 0.0  ;;  %v570_v40 = vmul.f32 %v1291_v24, %v460_v32  ;;  %v586_v41 = vmul.f32 %v1291_v24, %v524_v33 }
 0x100   : > { %v1000_v38 = vpack.c.bf16 %v640_v30, %v639_v27  ;;  %v1040_v39 = vpack.c.bf16 %v656_v31, %v655_v28  ;;  %v1128_v42 = vpop.f32.mrf.mxu0  ;;  %v1144_v43 = vpop.f32.mrf.mxu1  ;;  %v611_v46 = vadd.f32 %v1298_v29, %v572_v25  ;;  %v627_v47 = vadd.f32 %v1298_v29, %v588_v26 }
 0x101   : > { %v995_v44 = vpack.c.bf16 %v638_v36, %v637_v34  ;;  %v1035_v45 = vpack.c.bf16 %v654_v37, %v653_v35  ;;  %v573_v48 = vmul.f32 %v1128_v42, %v1291_v24  ;;  %v589_v49 = vmul.f32 %v1144_v43, %v1291_v24 }
 0x102   : > { %1064 = vst [vmem:[%s1321_s20 + $0x18] sm:$0xff] %v1000_v38   ;;  %1072 = vst [vmem:[%s1321_s20 + $0x58] sm:$0xff] %v1040_v39   ;;  %v463_v50 = vpop.f32.mrf.mxu0  ;;  %v527_v51 = vpop.f32.mrf.mxu1  ;;  %v609_v52 = vadd.f32 %v1298_v29, %v570_v40  ;;  %v625_v53 = vadd.f32 %v1298_v29, %v586_v41  ;;  %v643_v60 = vmax.f32 %v611_v46, 0.0  ;;  %v659_v61 = vmax.f32 %v627_v47, 0.0 }
 0x103   : > { %1063 = vst [vmem:[%s1321_s20 + $0x10] sm:$0xff] %v995_v44   ;;  %1071 = vst [vmem:[%s1321_s20 + $0x50] sm:$0xff] %v1035_v45   ;;  %v571_v54 = vmul.f32 %v1291_v24, %v463_v50  ;;  %v587_v55 = vmul.f32 %v1291_v24, %v527_v51  ;;  %v612_v56 = vadd.f32 %v1298_v29, %v573_v48 }
 0x104   : > { %v628_v57 = vadd.f32 %v1298_v29, %v589_v49  ;;  %v1131_v58 = vpop.f32.mrf.mxu0  ;;  %v1147_v59 = vpop.f32.mrf.mxu1  ;;  %v641_v6 = vmax.f32 %v609_v52, 0.0  ;;  %v657_v7 = vmax.f32 %v625_v53, 0.0 }
 0x105   : > { %v610_v62 = vadd.f32 %v1298_v29, %v571_v54  ;;  %v626_v63 = vadd.f32 %v1298_v29, %v587_v55  ;;  %v644_v0 = vmax.f32 %v612_v56, 0.0  ;;  %v576_v2 = vmul.f32 %v1131_v58, %v1291_v24 }
 0x106   : > { %v660_v1 = vmax.f32 %v628_v57, 0.0  ;;  %v592_v3 = vmul.f32 %v1147_v59, %v1291_v24  ;;  %v476_v4 = vpop.f32.mrf.mxu0  ;;  %v540_v5 = vpop.f32.mrf.mxu1 }
 0x107   : > { %v642_v8 = vmax.f32 %v610_v62, 0.0  ;;  %v658_v9 = vmax.f32 %v626_v63, 0.0  ;;  %v1010_v10 = vpack.c.bf16 %v644_v0, %v643_v60  ;;  %v574_v12 = vmul.f32 %v1291_v24, %v476_v4 }
 0x108   : > { %v1050_v11 = vpack.c.bf16 %v660_v1, %v659_v61  ;;  %v590_v13 = vmul.f32 %v1291_v24, %v540_v5  ;;  %v1132_v14 = vpop.f32.mrf.mxu0  ;;  %v1148_v15 = vpop.f32.mrf.mxu1  ;;  %v615_v18 = vadd.f32 %v1298_v29, %v576_v2  ;;  %v631_v19 = vadd.f32 %v1298_v29, %v592_v3 }
 0x109   : > { %v1005_v16 = vpack.c.bf16 %v642_v8, %v641_v6  ;;  %v1045_v17 = vpack.c.bf16 %v658_v9, %v657_v7  ;;  %1066 = vst [vmem:[%s1321_s20 + $0x28] sm:$0xff] %v1010_v10   ;;  %v577_v20 = vmul.f32 %v1132_v14, %v1291_v24  ;;  %v593_v21 = vmul.f32 %v1148_v15, %v1291_v24 }
 0x10a   : > { %1074 = vst [vmem:[%s1321_s20 + $0x68] sm:$0xff] %v1050_v11   ;;  %v479_v22 = vpop.f32.mrf.mxu0  ;;  %v543_v23 = vpop.f32.mrf.mxu1  ;;  %v613_v25 = vadd.f32 %v1298_v29, %v574_v12  ;;  %v629_v26 = vadd.f32 %v1298_v29, %v590_v13  ;;  %v647_v34 = vmax.f32 %v615_v18, 0.0  ;;  %v663_v35 = vmax.f32 %v631_v19, 0.0 }
 0x10b   : > { %1065 = vst [vmem:[%s1321_s20 + $0x20] sm:$0xff] %v1005_v16   ;;  %1073 = vst [vmem:[%s1321_s20 + $0x60] sm:$0xff] %v1045_v17   ;;  %v575_v27 = vmul.f32 %v1291_v24, %v479_v22  ;;  %v591_v28 = vmul.f32 %v1291_v24, %v543_v23  ;;  %v616_v30 = vadd.f32 %v1298_v29, %v577_v20 }
 0x10c   : > { %v632_v31 = vadd.f32 %v1298_v29, %v593_v21  ;;  %v645_v38 = vmax.f32 %v613_v25, 0.0  ;;  %v661_v39 = vmax.f32 %v629_v26, 0.0 }
 0x10d   : > { %v614_v32 = vadd.f32 %v1298_v29, %v575_v27  ;;  %v630_v33 = vadd.f32 %v1298_v29, %v591_v28  ;;  %v648_v36 = vmax.f32 %v616_v30, 0.0 }
 0x10e   : > { %v664_v37 = vmax.f32 %v632_v31, 0.0 }
 0x10f   : > { %v646_v40 = vmax.f32 %v614_v32, 0.0  ;;  %v662_v24 = vmax.f32 %v630_v33, 0.0  ;;  %v1020_v41 = vpack.c.bf16 %v648_v36, %v647_v34 }
 0x110   : > { %v1060_v42 = vpack.c.bf16 %v664_v37, %v663_v35 }
 0x111   : > { %v1015_v43 = vpack.c.bf16 %v646_v40, %v645_v38  ;;  %v1055_v44 = vpack.c.bf16 %v662_v24, %v661_v39  ;;  %1068 = vst [vmem:[%s1321_s20 + $0x38] sm:$0xff] %v1020_v41  }
 0x112   : > { %1076 = vst [vmem:[%s1321_s20 + $0x78] sm:$0xff] %v1060_v42  }
 0x113   : > { %1067 = vst [vmem:[%s1321_s20 + $0x30] sm:$0xff] %v1015_v43   ;;  %1075 = vst [vmem:[%s1321_s20 + $0x70] sm:$0xff] %v1055_v44  }
 0x114 PF: > { %s14_s15 = sadd.s32 1, %s1203_s15  }
 0x115   : > { %p11_p4 = scmp.ge.s32.totalorder %s14_s15, 4  }
 0x117   :  { %13 = sbr.rel (!%p11_p4) target bundleno = 1 (0x1), region = 66 }

// kernel: bottleneck_forward.5
= control target key start
LH: loop header
LB: loop body
LE: loop exit
PB: predicated region body
PF: predicated region fallthrough
CT: control target
= control target key end

     0   :  { %s1180_s1 = inlined_call_operand.vmem [shape: bf16[128,128], index: 1, kind: input, shape index: {}]   ;;  %s1181_s5 = inlined_call_operand.vmem [shape: bf16[128,128], index: 5, kind: input, shape index: {}]   ;;  %s1182_s0 = inlined_call_operand.vmem [shape: bf16[128,128], index: 0, kind: input, shape index: {}]   ;;  %s1183_s4 = inlined_call_operand.vmem [shape: bf16[128,128], index: 4, kind: input, shape index: {}]   ;;  %s1184_s2 = inlined_call_operand.vmem [shape: f32[1,128], index: 2, kind: input, shape index: {}]   ;;  %s1185_s6 = inlined_call_operand.vmem [shape: f32[1,128], index: 6, kind: input, shape index: {}]   ;;  %s1186_s3 = inlined_call_operand.vmem [shape: f32[1,128], index: 3, kind: input, shape index: {}]   ;;  %s1187_s7 = inlined_call_operand.vmem [shape: f32[1,128], index: 7, kind: input, shape index: {}]   ;;  %s1188_s8 = inlined_call_operand.vmem [shape: bf16[128,128], index: 8, kind: output, shape index: {}]  }
   0x1   :  { %v899_v0 = vld [vmem:[%s1180_s1 + $0x38] sm:$0xff]   ;;  %v901_v2 = vld [vmem:[%s1180_s1 + $0x30] sm:$0xff]   ;;  %v903_v4 = vld [vmem:[%s1180_s1 + $0x28] sm:$0xff]  }
   0x2   :  { %v900_v1 = vld [vmem:[%s1181_s5 + $0x38] sm:$0xff]   ;;  %835 = vmatprep.subr.bf16.mxu0 %v899_v0  ;;  %v902_v3 = vld [vmem:[%s1181_s5 + $0x30] sm:$0xff]   ;;  %v904_v5 = vld [vmem:[%s1181_s5 + $0x28] sm:$0xff]  }
   0x3   :  { %867 = vmatprep.subr.bf16.mxu1 %v900_v1  ;;  %836 = vmatpush3.bf16.msra.mxu0 %v899_v0  ;;  %v905_v6 = vld [vmem:[%s1180_s1 + $0x20] sm:$0xff]   ;;  %v907_v8 = vld [vmem:[%s1180_s1 + $0x18] sm:$0xff]   ;;  %v909_v10 = vld [vmem:[%s1180_s1 + $0x10] sm:$0xff]  }
   0x4   :  { %868 = vmatpush3.bf16.msra.mxu1 %v900_v1  ;;  %837 = vmatprep.subr.bf16.mxu0 %v901_v2  ;;  %v906_v7 = vld [vmem:[%s1181_s5 + $0x20] sm:$0xff]   ;;  %v908_v9 = vld [vmem:[%s1181_s5 + $0x18] sm:$0xff]   ;;  %v910_v11 = vld [vmem:[%s1181_s5 + $0x10] sm:$0xff]  }
   0x5   :  { %869 = vmatprep.subr.bf16.mxu1 %v902_v3  ;;  %v915_v12 = vld [vmem:[%s1182_s0] sm:$0xff]   ;;  %v911_v14 = vld [vmem:[%s1180_s1 + $0x8] sm:$0xff]   ;;  %v919_v20 = vld [vmem:[%s1182_s0 + $0x10] sm:$0xff]  }
   0x6   :  { %v916_v13 = vld [vmem:[%s1183_s4] sm:$0xff]   ;;  %851 = vmatprep.mubr.bf16.mxu0 %v915_v12  ;;  %v912_v15 = vld [vmem:[%s1181_s5 + $0x8] sm:$0xff]   ;;  %v920_v21 = vld [vmem:[%s1183_s4 + $0x10] sm:$0xff]  }
   0x7   :  { %838 = vmatpush3.bf16.msra.mxu0 %v901_v2  ;;  %883 = vmatprep.mubr.bf16.mxu1 %v916_v13  ;;  %v913_v16 = vld [vmem:[%s1180_s1] sm:$0xff]   ;;  %v917_v18 = vld [vmem:[%s1182_s0 + $0x8] sm:$0xff]   ;;  %v921_v22 = vld [vmem:[%s1182_s0 + $0x18] sm:$0xff]  }
   0x8   :  { %870 = vmatpush3.bf16.msra.mxu1 %v902_v3  ;;  %839 = vmatprep.subr.bf16.mxu0 %v903_v4  ;;  %v914_v17 = vld [vmem:[%s1181_s5] sm:$0xff]   ;;  %v918_v19 = vld [vmem:[%s1183_s4 + $0x8] sm:$0xff]   ;;  %v922_v23 = vld [vmem:[%s1183_s4 + $0x18] sm:$0xff]  }
   0x9   :  { %871 = vmatprep.subr.bf16.mxu1 %v904_v5  ;;  %v923_v24 = vld [vmem:[%s1182_s0 + $0x20] sm:$0xff]   ;;  %v925_v26 = vld [vmem:[%s1182_s0 + $0x28] sm:$0xff]   ;;  %v927_v28 = vld [vmem:[%s1182_s0 + $0x30] sm:$0xff]  }
   0xa   :  { %v924_v25 = vld [vmem:[%s1183_s4 + $0x20] sm:$0xff]   ;;  %v926_v27 = vld [vmem:[%s1183_s4 + $0x28] sm:$0xff]   ;;  %v928_v29 = vld [vmem:[%s1183_s4 + $0x30] sm:$0xff]  }
   0xb   :  { %840 = vmatpush3.bf16.msra.mxu0 %v903_v4  ;;  %v929_v30 = vld [vmem:[%s1182_s0 + $0x38] sm:$0xff]   ;;  %v1075_v32 = vld [vmem:[%s1184_s2] ss:$0 sm:$0xff] }
   0xc   :  { %872 = vmatpush3.bf16.msra.mxu1 %v904_v5  ;;  %841 = vmatprep.subr.bf16.mxu0 %v905_v6  ;;  %v930_v31 = vld [vmem:[%s1183_s4 + $0x38] sm:$0xff]   ;;  %v1080_v33 = vld [vmem:[%s1185_s6] ss:$0 sm:$0xff] }
   0xd   :  { %873 = vmatprep.subr.bf16.mxu1 %v906_v7  ;;  %v1085_v35 = vld [vmem:[%s1186_s3] ss:$0 sm:$0xff] }
   0xe   :  { %v1091_v38 = vld [vmem:[%s1187_s7] ss:$0 sm:$0xff] }
   0xf   :  { %842 = vmatpush3.bf16.msra.mxu0 %v905_v6 }
  0x10   :  { %874 = vmatpush3.bf16.msra.mxu1 %v906_v7  ;;  %843 = vmatprep.subr.bf16.mxu0 %v907_v8 }
  0x11   :  { %875 = vmatprep.subr.bf16.mxu1 %v908_v9 }
  0x13   :  { %844 = vmatpush3.bf16.msra.mxu0 %v907_v8 }
  0x14   :  { %876 = vmatpush3.bf16.msra.mxu1 %v908_v9  ;;  %845 = vmatprep.subr.bf16.mxu0 %v909_v10 }
  0x15   :  { %877 = vmatprep.subr.bf16.mxu1 %v910_v11 }
  0x17   :  { %846 = vmatpush3.bf16.msra.mxu0 %v909_v10 }
  0x18   :  { %878 = vmatpush3.bf16.msra.mxu1 %v910_v11  ;;  %847 = vmatprep.subr.bf16.mxu0 %v911_v14 }
  0x19   :  { %879 = vmatprep.subr.bf16.mxu1 %v912_v15 }
  0x1b   :  { %848 = vmatpush3.bf16.msra.mxu0 %v911_v14 }
  0x1c   :  { %880 = vmatpush3.bf16.msra.mxu1 %v912_v15  ;;  %849 = vmatprep.subr.bf16.mxu0 %v913_v16 }
  0x1d   :  { %881 = vmatprep.subr.bf16.mxu1 %v914_v17 }
  0x1f   :  { %850 = vmatpush3.bf16.msra.mxu0 %v913_v16 }
  0x20   :  { %882 = vmatpush3.bf16.msra.mxu1 %v914_v17 }
  0x22   :  { %852 = vmatmul.mubr.bf16.vlgmr.msra.gmra.mxu0 %v917_v18 }
  0x23   :  { %884 = vmatmul.mubr.bf16.vlgmr.msra.gmra.mxu1 %v918_v19  ;;  %855 = vmatprep.mubr.bf16.mxu0 %v919_v20 }
  0x24   :  { %887 = vmatprep.mubr.bf16.mxu1 %v920_v21 }
  0x2a   :  { %856 = vmatmul.mubr.bf16.gmra.mxu0 %v921_v22 }
  0x2b   :  { %888 = vmatmul.mubr.bf16.gmra.mxu1 %v922_v23  ;;  %859 = vmatprep.mubr.bf16.mxu0 %v923_v24 }
  0x2c   :  { %891 = vmatprep.mubr.bf16.mxu1 %v924_v25 }
  0x32   :  { %860 = vmatmul.mubr.bf16.gmra.mxu0 %v925_v26 }
  0x33   :  { %892 = vmatmul.mubr.bf16.gmra.mxu1 %v926_v27  ;;  %863 = vmatprep.mubr.bf16.mxu0 %v927_v28 }
  0x34   :  { %895 = vmatprep.mubr.bf16.mxu1 %v928_v29 }
  0x3a   :  { %864 = vmatmul.mubr.bf16.gmra.mxu0 %v929_v30 }
  0x3b   :  { %896 = vmatmul.mubr.bf16.gmra.mxu1 %v930_v31 }
  0xe2   :  { %v853_v34 = vpop.f32.mrf.mxu0 }
  0xe3   :  { %v264_v36 = vmul.f32 %v853_v34, %v1075_v32  ;;  %v885_v37 = vpop.f32.mrf.mxu1 }
  0xe4   :  { %v535_v39 = vmul.f32 %v885_v37, %v1080_v33  ;;  %v192_v40 = vpop.f32.mrf.mxu0 }
  0xe5   :  { %v287_v41 = vadd.f32 %v1085_v35, %v264_v36  ;;  %v262_v42 = vmul.f32 %v1075_v32, %v192_v40  ;;  %v463_v43 = vpop.f32.mrf.mxu1 }
  0xe6   :  { %v558_v44 = vadd.f32 %v1091_v38, %v535_v39  ;;  %v533_v45 = vmul.f32 %v1080_v33, %v463_v43  ;;  %v854_v46 = vpop.f32.mrf.mxu0 }
  0xe7   :  { %v265_v47 = vmul.f32 %v854_v46, %v1075_v32  ;;  %v886_v48 = vpop.f32.mrf.mxu1  ;;  %v285_v49 = vadd.f32 %v1085_v35, %v262_v42 }
  0xe8   :  { %v556_v50 = vadd.f32 %v1091_v38, %v533_v45  ;;  %v536_v51 = vmul.f32 %v886_v48, %v1080_v33  ;;  %v195_v52 = vpop.f32.mrf.mxu0  ;;  %v574_v53 = vadd.f32 %v558_v44, %v287_v41 }
  0xe9   :  { %v288_v54 = vadd.f32 %v1085_v35, %v265_v47  ;;  %v263_v55 = vmul.f32 %v1075_v32, %v195_v52  ;;  %v466_v56 = vpop.f32.mrf.mxu1 }
  0xea   :  { %v559_v57 = vadd.f32 %v1091_v38, %v536_v51  ;;  %v534_v58 = vmul.f32 %v1080_v33, %v466_v56  ;;  %v857_v59 = vpop.f32.mrf.mxu0  ;;  %v572_v63 = vadd.f32 %v556_v50, %v285_v49  ;;  %v590_v4 = vmax.f32 %v574_v53, 0.0 }
  0xeb   :  { %v286_v60 = vadd.f32 %v1085_v35, %v263_v55  ;;  %v268_v61 = vmul.f32 %v857_v59, %v1075_v32  ;;  %v889_v62 = vpop.f32.mrf.mxu1 }
  0xec   :  { %v575_v0 = vadd.f32 %v559_v57, %v288_v54  ;;  %v557_v1 = vadd.f32 %v1091_v38, %v534_v58  ;;  %v539_v2 = vmul.f32 %v889_v62, %v1080_v33  ;;  %v208_v3 = vpop.f32.mrf.mxu0  ;;  %v588_v16 = vmax.f32 %v572_v63, 0.0 }
  0xed   :  { %v291_v5 = vadd.f32 %v1085_v35, %v268_v61  ;;  %v266_v6 = vmul.f32 %v1075_v32, %v208_v3  ;;  %v479_v7 = vpop.f32.mrf.mxu1 }
  0xee   :  { %v591_v8 = vmax.f32 %v575_v0, 0.0  ;;  %v573_v9 = vadd.f32 %v557_v1, %v286_v60  ;;  %v562_v10 = vadd.f32 %v1091_v38, %v539_v2  ;;  %v537_v11 = vmul.f32 %v1080_v33, %v479_v7  ;;  %v858_v12 = vpop.f32.mrf.mxu0 }
  0xef   :  { %v289_v13 = vadd.f32 %v1085_v35, %v266_v6  ;;  %v269_v14 = vmul.f32 %v858_v12, %v1075_v32  ;;  %v890_v15 = vpop.f32.mrf.mxu1 }
  0xf0   :  { %v764_v17 = vpack.c.bf16 %v591_v8, %v590_v4  ;;  %v589_v18 = vmax.f32 %v573_v9, 0.0  ;;  %v560_v19 = vadd.f32 %v1091_v38, %v537_v11  ;;  %v211_v20 = vpop.f32.mrf.mxu0  ;;  %v540_v22 = vmul.f32 %v890_v15, %v1080_v33 }
  0xf1   :  { %v292_v21 = vadd.f32 %v1085_v35, %v269_v14  ;;  %v267_v23 = vmul.f32 %v1075_v32, %v211_v20  ;;  %v482_v24 = vpop.f32.mrf.mxu1  ;;  %v578_v26 = vadd.f32 %v562_v10, %v291_v5 }
  0xf2   :  { %796 = vst [vmem:[%s1188_s8 + $0x8] sm:$0xff] %v764_v17   ;;  %v759_v25 = vpack.c.bf16 %v589_v18, %v588_v16  ;;  %v538_v27 = vmul.f32 %v1080_v33, %v482_v24  ;;  %v861_v28 = vpop.f32.mrf.mxu0  ;;  %v576_v29 = vadd.f32 %v560_v19, %v289_v13  ;;  %v563_v30 = vadd.f32 %v1091_v38, %v540_v22 }
  0xf3   :  { %v290_v31 = vadd.f32 %v1085_v35, %v267_v23  ;;  %v272_v34 = vmul.f32 %v861_v28, %v1075_v32  ;;  %v893_v36 = vpop.f32.mrf.mxu1  ;;  %v594_v49 = vmax.f32 %v578_v26, 0.0 }
  0xf4   :  { %760 = vst [vmem:[%s1188_s8] sm:$0xff] %v759_v25   ;;  %v561_v37 = vadd.f32 %v1091_v38, %v538_v27  ;;  %v543_v39 = vmul.f32 %v893_v36, %v1080_v33  ;;  %v224_v40 = vpop.f32.mrf.mxu0  ;;  %v579_v41 = vadd.f32 %v563_v30, %v292_v21  ;;  %v592_v50 = vmax.f32 %v576_v29, 0.0 }
  0xf5   :  { %v295_v42 = vadd.f32 %v1085_v35, %v272_v34  ;;  %v270_v43 = vmul.f32 %v1075_v32, %v224_v40  ;;  %v495_v44 = vpop.f32.mrf.mxu1 }
  0xf6   :  { %v577_v45 = vadd.f32 %v561_v37, %v290_v31  ;;  %v566_v46 = vadd.f32 %v1091_v38, %v543_v39  ;;  %v541_v47 = vmul.f32 %v1080_v33, %v495_v44  ;;  %v862_v48 = vpop.f32.mrf.mxu0  ;;  %v595_v51 = vmax.f32 %v579_v41, 0.0 }
  0xf7   :  { %v273_v52 = vmul.f32 %v862_v48, %v1075_v32  ;;  %v894_v53 = vpop.f32.mrf.mxu1  ;;  %v293_v56 = vadd.f32 %v1085_v35, %v270_v43 }
  0xf8   :  { %v593_v54 = vmax.f32 %v577_v45, 0.0  ;;  %v582_v55 = vadd.f32 %v566_v46, %v295_v42  ;;  %v544_v57 = vmul.f32 %v894_v53, %v1080_v33  ;;  %v227_v58 = vpop.f32.mrf.mxu0  ;;  %v774_v59 = vpack.c.bf16 %v595_v51, %v594_v49 }
  0xf9   :  { %v564_v60 = vadd.f32 %v1091_v38, %v541_v47  ;;  %v296_v61 = vadd.f32 %v1085_v35, %v273_v52  ;;  %v271_v62 = vmul.f32 %v1075_v32, %v227_v58  ;;  %v498_v63 = vpop.f32.mrf.mxu1 }
  0xfa   :  { %v769_v0 = vpack.c.bf16 %v593_v54, %v592_v50  ;;  %v567_v1 = vadd.f32 %v1091_v38, %v544_v57  ;;  %v865_v2 = vpop.f32.mrf.mxu0  ;;  %798 = vst [vmem:[%s1188_s8 + $0x18] sm:$0xff] %v774_v59   ;;  %v542_v4 = vmul.f32 %v1080_v33, %v498_v63  ;;  %v598_v10 = vmax.f32 %v582_v55, 0.0 }
  0xfb   :  { %v294_v3 = vadd.f32 %v1085_v35, %v271_v62  ;;  %v276_v5 = vmul.f32 %v865_v2, %v1075_v32  ;;  %v897_v6 = vpop.f32.mrf.mxu1  ;;  %v580_v11 = vadd.f32 %v564_v60, %v293_v56 }
  0xfc   :  { %797 = vst [vmem:[%s1188_s8 + $0x10] sm:$0xff] %v769_v0   ;;  %v583_v7 = vadd.f32 %v567_v1, %v296_v61  ;;  %v547_v8 = vmul.f32 %v897_v6, %v1080_v33  ;;  %v240_v9 = vpop.f32.mrf.mxu0  ;;  %v565_v12 = vadd.f32 %v1091_v38, %v542_v4 }
  0xfd   :  { %v274_v13 = vmul.f32 %v1075_v32, %v240_v9  ;;  %v511_v14 = vpop.f32.mrf.mxu1  ;;  %v299_v16 = vadd.f32 %v1085_v35, %v276_v5  ;;  %v596_v28 = vmax.f32 %v580_v11, 0.0 }
  0xfe   :  { %v599_v15 = vmax.f32 %v583_v7, 0.0  ;;  %v570_v17 = vadd.f32 %v1091_v38, %v547_v8  ;;  %v545_v18 = vmul.f32 %v1080_v33, %v511_v14  ;;  %v866_v19 = vpop.f32.mrf.mxu0  ;;  %v581_v20 = vadd.f32 %v565_v12, %v294_v3 }
  0xff   :  { %v277_v21 = vmul.f32 %v866_v19, %v1075_v32  ;;  %v898_v22 = vpop.f32.mrf.mxu1  ;;  %v297_v24 = vadd.f32 %v1085_v35, %v274_v13 }
 0x100   :  { %v784_v23 = vpack.c.bf16 %v599_v15, %v598_v10  ;;  %v568_v25 = vadd.f32 %v1091_v38, %v545_v18  ;;  %v548_v26 = vmul.f32 %v898_v22, %v1080_v33  ;;  %v243_v27 = vpop.f32.mrf.mxu0  ;;  %v597_v29 = vmax.f32 %v581_v20, 0.0 }
 0x101   :  { %v300_v30 = vadd.f32 %v1085_v35, %v277_v21  ;;  %v275_v31 = vmul.f32 %v1075_v32, %v243_v27  ;;  %v514_v34 = vpop.f32.mrf.mxu1  ;;  %v586_v36 = vadd.f32 %v570_v17, %v299_v16 }
 0x102   :  { %800 = vst [vmem:[%s1188_s8 + $0x28] sm:$0xff] %v784_v23   ;;  %v571_v37 = vadd.f32 %v1091_v38, %v548_v26  ;;  %v546_v39 = vmul.f32 %v1080_v33, %v514_v34  ;;  %v779_v40 = vpack.c.bf16 %v597_v29, %v596_v28  ;;  %v584_v42 = vadd.f32 %v568_v25, %v297_v24 }
 0x103   :  { %v298_v41 = vadd.f32 %v1085_v35, %v275_v31  ;;  %v602_v32 = vmax.f32 %v586_v36, 0.0 }
 0x104   :  { %v587_v43 = vadd.f32 %v571_v37, %v300_v30  ;;  %v569_v44 = vadd.f32 %v1091_v38, %v546_v39  ;;  %799 = vst [vmem:[%s1188_s8 + $0x20] sm:$0xff] %v779_v40   ;;  %v600_v47 = vmax.f32 %v584_v42, 0.0 }
 0x106   :  { %v603_v45 = vmax.f32 %v587_v43, 0.0  ;;  %v585_v46 = vadd.f32 %v569_v44, %v298_v41 }
 0x108   :  { %v794_v48 = vpack.c.bf16 %v603_v45, %v602_v32  ;;  %v601_v49 = vmax.f32 %v585_v46, 0.0 }
 0x10a   :  { %802 = vst [vmem:[%s1188_s8 + $0x38] sm:$0xff] %v794_v48   ;;  %v789_v33 = vpack.c.bf16 %v601_v49, %v600_v47 }
 0x10c   :  { %801 = vst [vmem:[%s1188_s8 + $0x30] sm:$0xff] %v789_v33  }

// kernel: bottleneck_forward.4
= control target key start
LH: loop header
LB: loop body
LE: loop exit
PB: predicated region body
PF: predicated region fallthrough
CT: control target
= control target key end

     0   :  { %s2919_s15 = smov 0   ;;  %s2921_s16 = smov 0   ;;  %s3453_s0 = inlined_call_operand.vmem [shape: bf16[8,9,9,128], index: 0, kind: input, shape index: {}]   ;;  %s3454_s1 = inlined_call_operand.vmem [shape: bf16[9,128,128], index: 1, kind: input, shape index: {}]   ;;  %s3455_s2 = inlined_call_operand.vmem [shape: f32[1,128], index: 2, kind: input, shape index: {}]   ;;  %s3456_s3 = inlined_call_operand.vmem [shape: f32[1,128], index: 3, kind: input, shape index: {}]   ;;  %s3457_s4 = inlined_call_operand.vmem [shape: bf16[2,64,128], index: 4, kind: output, shape index: {}]  }
   0x1   :  { %s2923_s17 = smov 0  }
   0x2 LB: > { %s26_s18 = sadd.s32 1, %s2888_s16  ;;  %p2091_p0 = scmp.ge.s32.totalorder %s2892_s17, 1  ;;  %s2892_s17 = sphi %s2923_s17, %s14_s17   ;;  %s2888_s16 = sphi %s2921_s16, %s3469_s16   ;;  %s2884_s15 = sphi %s2919_s15, %s3468_s15  }
   0x3   : > { %p28_p1 = scmp.ge.s32.totalorder %s26_s18, 2  ;;  %p178_p2 = scmp.lt.s32.totalorder %s2892_s17, 3 }
   0x5   : > { %s3471_s18 = smov (%p28_p1, %s26_s18), 0  ;;  %p179_p3 = pnand %p2091_p0, %p178_p2 }
   0x7   : > { %182 = sbr.rel (%p179_p3) target bundleno = 384 (0x180), region = 36 }
   0xc   : > { %v2774_v0 = vld [vmem:[%s3454_s1 + $0x78] sm:$0xff]   ;;  %s2092_s21 = sshll.u32 %s2884_s15, 2  ;;  %v2776_v2 = vld [vmem:[%s3454_s1 + $0x70] sm:$0xff]   ;;  %v2778_v4 = vld [vmem:[%s3454_s1 + $0x68] sm:$0xff]   ;;  %vm598_vm0 = vsmask.f32 3328 }
   0xd   : > { %v2775_v1 = vld [vmem:[%s3454_s1 + $0x38] sm:$0xff]   ;;  %p210_p4 = scmp.lt.s32.totalorder %s2092_s21, 7  ;;  %2517 = vmatprep.subr.bf16.mxu0 %v2774_v0  ;;  %v2777_v3 = vld [vmem:[%s3454_s1 + $0x30] sm:$0xff]   ;;  %v2779_v5 = vld [vmem:[%s3454_s1 + $0x28] sm:$0xff]   ;;  %vm599_vm1 = vsmask.f32 7440 }
   0xe   : > { %2541 = vmatprep.subr.bf16.mxu1 %v2775_v1  ;;  %2518 = vmatpush3.bf16.msra.mxu0 %v2774_v0  ;;  %v2780_v6 = vld [vmem:[%s3454_s1 + $0x60] sm:$0xff]   ;;  %v2782_v8 = vld [vmem:[%s3454_s1 + $0x58] sm:$0xff]   ;;  %v2784_v10 = vld [vmem:[%s3454_s1 + $0x50] sm:$0xff]   ;;  %p217_p5 = scmp.lt.s32.totalorder %s2884_s15, 1 }
   0xf   : > { %2542 = vmatpush3.bf16.msra.mxu1 %v2775_v1  ;;  %2519 = vmatprep.subr.bf16.mxu0 %v2776_v2  ;;  %s3473_s21 = smov (!%p210_p4, %s2092_s21), 7  ;;  %v2781_v7 = vld [vmem:[%s3454_s1 + $0x20] sm:$0xff]   ;;  %v2783_v9 = vld [vmem:[%s3454_s1 + $0x18] sm:$0xff]   ;;  %v2785_v14 = vld [vmem:[%s3454_s1 + $0x10] sm:$0xff]  }
  0x10   : > { %2543 = vmatprep.subr.bf16.mxu1 %v2777_v3  ;;  %s2749_s10 = smul.u32 72, %s3473_s21  ;;  %v2786_v20 = vld [vmem:[%s3454_s1 + $0x48] sm:$0xff]   ;;  %v2788_v23 = vld [vmem:[%s3454_s1 + $0x40] sm:$0xff]   ;;  %v2795_v33 = vld [vmem:[%s3454_s1 + $0xb8] sm:$0xff]   ;;  %s3475_s15 = smov (!%p217_p5, %s2884_s15), 1 }
  0x11   : > { %v2787_v21 = vld [vmem:[%s3454_s1 + $0x8] sm:$0xff]   ;;  %v2789_v25 = vld [vmem:[%s3454_s1] sm:$0xff]   ;;  %v2796_v35 = vld [vmem:[%s3454_s1 + $0xf8] sm:$0xff]   ;;  %s2377_s23 = sshll.u32 %s3475_s15, 5 }
  0x12   : > { %2520 = vmatpush3.bf16.msra.mxu0 %v2776_v2  ;;  %s2973_s22 = scalar_lea.vmem %s3453_s0, %s2749_s10  ;;  %v2797_v53 = vld [vmem:[%s3454_s1 + $0xb0] sm:$0xff]   ;;  %v2799_v61 = vld [vmem:[%s3454_s1 + $0xa8] sm:$0xff]   ;;  %vm3097_vm2 = vmor %vm598_vm0, %vm599_vm1  ;;  %s224_s26 = scalar_lea.vmem %s3457_s4, %s2377_s23 }
  0x13   : > { %2544 = vmatpush3.bf16.msra.mxu1 %v2777_v3  ;;  %2521 = vmatprep.subr.bf16.mxu0 %v2778_v4  ;;  %v2104_v11 = vld [vmem:[%s2973_s22 + $0x48] sm:$0xf]  ;;  %v2980_v12 = vld [vmem:[%s2973_s22 + $0x50] sm:$0xf]  ;;  %v2983_v13 = vld [vmem:[%s2973_s22 + $0x58] sm:$0xf] }
  0x14   : > { %2545 = vmatprep.subr.bf16.mxu1 %v2779_v5  ;;  %v2145_v15 = vcombine.low %v2104_v11, %v2980_v12  ;;  %v2325_v16 = vcombine.low %v2980_v12, %v2983_v13  ;;  %v231_v17 = vld [vmem:[%s2973_s22] sm:$0xf]  ;;  %v2993_v18 = vld [vmem:[%s2973_s22 + $0x8] sm:$0xf]  ;;  %v3003_v22 = vld [vmem:[%s2973_s22 + $0x10] sm:$0xf] }
  0x15   : > { %v2157_v19 = vcombine.low %v231_v17, %v2993_v18  ;;  %v2297_v24 = vcombine.low %v2993_v18, %v3003_v22  ;;  %v602_v26 = vshrl.u32 %v231_v17, 16  ;;  %v605_v27 = vshll.u32 %v231_v17, 16  ;;  %v3016_v30 = vld [vmem:[%s2973_s22 + $0x60] sm:$0xf]  ;;  %v3019_v31 = vld [vmem:[%s2973_s22 + $0x18] sm:$0xf] }
  0x16   : > { %2522 = vmatpush3.bf16.msra.mxu0 %v2778_v4  ;;  %2533 = vmatprep.mubr.bf16.mxu0 %v2145_v15  ;;  %v616_v28 = vshrl.u32 %v2993_v18, 16  ;;  %v619_v29 = vshll.u32 %v2993_v18, 16  ;;  %v630_v32 = vshrl.u32 %v3003_v22, 16  ;;  %v633_v34 = vshll.u32 %v3003_v22, 16  ;;  %v3034_v43 = vld [vmem:[%s2973_s22 + $0x68] sm:$0xf] }
  0x17   : > { %2546 = vmatpush3.bf16.msra.mxu1 %v2779_v5  ;;  %2523 = vmatprep.subr.bf16.mxu0 %v2780_v6  ;;  %v644_v36 = vshrl.u32 %v3019_v31, 16  ;;  %v647_v37 = vshll.u32 %v3019_v31, 16  ;;  %v604_v38 = vrot.slane %v602_v26, 4  ;;  %v607_v39 = vrot.slane %v605_v27, 5  ;;  %v3039_v45 = vld [vmem:[%s2973_s22 + $0x70] sm:$0xf] }
  0x18   : > { %2547 = vmatprep.subr.bf16.mxu1 %v2781_v7  ;;  %2557 = vmatprep.mubr.bf16.mxu1 %v2157_v19  ;;  %v618_v40 = vrot.slane %v616_v28, 4  ;;  %v621_v41 = vrot.slane %v619_v29, 5  ;;  %v2146_v42 = vcombine.low %v2983_v13, %v3016_v30  ;;  %v2158_v44 = vcombine.low %v3003_v22, %v3019_v31  ;;  %v3044_v47 = vld [vmem:[%s2973_s22 + $0x20] sm:$0xf]  ;;  %v3047_v48 = vld [vmem:[%s2973_s22 + $0x28] sm:$0xf] }
  0x19   : > { %v2326_v46 = vcombine.low %v3016_v30, %v3034_v43  ;;  %v632_v49 = vrot.slane %v630_v32, 4  ;;  %v635_v50 = vrot.slane %v633_v34, 5  ;;  %v646_v51 = vrot.slane %v644_v36, 4  ;;  %v2798_v54 = vld [vmem:[%s3454_s1 + $0xf0] sm:$0xff]   ;;  %v3060_v58 = vld [vmem:[%s2973_s22 + $0x78] sm:$0xf] }
  0x1a   : > { %2524 = vmatpush3.bf16.msra.mxu0 %v2780_v6  ;;  %v649_v52 = vrot.slane %v647_v37, 5  ;;  %v2147_v55 = vcombine.low %v3034_v43, %v3039_v45  ;;  %v658_v56 = vshrl.u32 %v3044_v47, 16  ;;  %v661_v57 = vshll.u32 %v3044_v47, 16  ;;  %v3070_v63 = vld [vmem:[%s2973_s22 + $0x80] sm:$0xf]  ;;  %v2800_v5 = vld [vmem:[%s3454_s1 + $0xe8] sm:$0xff]  }
  0x1b   : > { %2548 = vmatpush3.bf16.msra.mxu1 %v2781_v7  ;;  %2525 = vmatprep.subr.bf16.mxu0 %v2782_v8  ;;  %v2298_v59 = vcombine.low %v3019_v31, %v3044_v47  ;;  %v608_v60 = vor.u32 %v607_v39, %v604_v38  ;;  %v2159_v62 = vcombine.low %v3044_v47, %v3047_v48  ;;  %v3073_v0 = vld [vmem:[%s2973_s22 + $0x30] sm:$0xf]  ;;  %v3076_v1 = vld [vmem:[%s2973_s22 + $0x38] sm:$0xf]  ;;  %v2801_v7 = vld [vmem:[%s3454_s1 + $0xa0] sm:$0xff]   ;;  %v672_v38 = vshrl.u32 %v3047_v48, 16 }
  0x1c   : > { %2549 = vmatprep.subr.bf16.mxu1 %v2783_v9  ;;  %v622_v2 = vor.u32 %v621_v41, %v618_v40  ;;  %v2299_v3 = vcombine.low %v3047_v48, %v3073_v0  ;;  %v2327_v4 = vcombine.low %v3039_v45, %v3060_v58  ;;  %v650_v15 = vor.u32 %v649_v52, %v646_v51  ;;  %v274_v17 = vld [vmem:[%s2973_s22 + $0x4] sm:$0x1]  ;;  %v275_v19 = vld [vmem:[%s2973_s22 + $0xc] sm:$0x1]  ;;  %v2096_v27 = vld [vmem:[%s2973_s22 + $0x90] sm:$0xf] }
  0x1d   : > { %v609_v6 = vrot.slane %v608_v60, 4  ;;  %v3103_v28 = vld [vmem:[%s2973_s22 + $0x98] sm:$0xf]  ;;  %v276_v34 = vld [vmem:[%s2973_s22 + $0x14] sm:$0x1]  ;;  %v675_v41 = vshll.u32 %v3047_v48, 16 }
  0x1e   : > { %2526 = vmatpush3.bf16.msra.mxu0 %v2782_v8  ;;  %v2148_v8 = vcombine.low %v3060_v58, %v3070_v63  ;;  %v623_v11 = vrot.slane %v622_v2, 4  ;;  %v3107_v36 = vrot.slane %v650_v15, 4  ;;  %v2803_v37 = vld [vmem:[%s3454_s1 + $0x98] sm:$0xff]   ;;  %v639_v39 = vshll.u32 %v276_v34, 16  ;;  %v2813_v15 = vld [vmem:[%s3454_s1 + $0xc8] sm:$0xff]   ;;  %v2847_v26 = vld [vmem:[%s3454_s1 + $0x1e0] sm:$0xff]  }
  0x1f   : > { %2550 = vmatpush3.bf16.msra.mxu1 %v2783_v9  ;;  %2527 = vmatprep.subr.bf16.mxu0 %v2784_v10  ;;  %v2802_v9 = vld [vmem:[%s3454_s1 + $0xe0] sm:$0xff]   ;;  %v2804_v40 = vld [vmem:[%s3454_s1 + $0xd8] sm:$0xff]   ;;  %v686_v51 = vshrl.u32 %v3073_v0, 16  ;;  %v689_v52 = vshll.u32 %v3073_v0, 16  ;;  %v2852_v12 = vld [vmem:[%s3454_s1 + $0x188] sm:$0xff]  }
  0x20   : > { %2551 = vmatprep.subr.bf16.mxu1 %v2785_v14  ;;  %v641_v60 = vrot.slane %v639_v39, 5  ;;  %v2853_v13 = vld [vmem:[%s3454_s1 + $0x1c8] sm:$0xff]   ;;  %v2855_v18 = vld [vmem:[%s3454_s1 + $0x1c0] sm:$0xff]   ;;  %v2858_v22 = vld [vmem:[%s3454_s1 + $0x238] sm:$0xff]  }
  0x21   : > { %v2865_v43 = vld [vmem:[%s3454_s1 + $0x220] sm:$0xff]   ;;  %v2866_v45 = vld [vmem:[%s3454_s1 + $0x218] sm:$0xff]   ;;  %v2868_v47 = vld [vmem:[%s3454_s1 + $0x208] sm:$0xff]  }
  0x22   : > { %2528 = vmatpush3.bf16.msra.mxu0 %v2784_v10  ;;  %v2160_v10 = vcombine.low %v3073_v0, %v3076_v1  ;;  %v2869_v48 = vld [vmem:[%s3454_s1 + $0x200] sm:$0xff]  }
  0x23   : > { %2552 = vmatpush3.bf16.msra.mxu1 %v2785_v14  ;;  %2529 = vmatprep.subr.bf16.mxu0 %v2786_v20  ;;  %v636_v14 = vor.u32 %v635_v50, %v632_v49  ;;  %v277_v49 = vld [vmem:[%s2973_s22 + $0x1c] sm:$0x1] }
  0x24   : > { %2553 = vmatprep.subr.bf16.mxu1 %v2787_v21  ;;  %v653_v2 = vshll.u32 %v277_v49, 16 }
  0x26   : > { %2530 = vmatpush3.bf16.msra.mxu0 %v2786_v20  ;;  %v660_v20 = vrot.slane %v658_v56, 4  ;;  %v2810_v56 = vld [vmem:[%s3454_s1 + $0x90] sm:$0xff]  }
  0x27   : > { %2554 = vmatpush3.bf16.msra.mxu1 %v2787_v21  ;;  %2531 = vmatprep.subr.bf16.mxu0 %v2788_v23  ;;  %v663_v21 = vrot.slane %v661_v57, 5  ;;  %v2811_v57 = vld [vmem:[%s3454_s1 + $0xd0] sm:$0xff]  }
  0x28   : > { %2555 = vmatprep.subr.bf16.mxu1 %v2789_v25 }
  0x29   : > { %v664_v50 = vor.u32 %v663_v21, %v660_v20 }
  0x2a   : > { %2532 = vmatpush3.bf16.msra.mxu0 %v2788_v23  ;;  %v611_v23 = vshll.u32 %v274_v17, 16  ;;  %v278_v17 = vld [vmem:[%s2973_s22 + $0x24] sm:$0x1] }
  0x2b   : > { %2556 = vmatpush3.bf16.msra.mxu1 %v2789_v25  ;;  %2565 = vmatprep.subr.bf16.mxu0 %v2795_v33  ;;  %v625_v25 = vshll.u32 %v275_v19, 16 }
  0x2c   : > { %2589 = vmatprep.subr.bf16.mxu1 %v2796_v35  ;;  %v613_v29 = vrot.slane %v611_v23, 5  ;;  %v655_v23 = vrot.slane %v653_v2, 5  ;;  %v3184_v2 = vld [vmem:[%s2973_s22 + $0xa8] sm:$0xf] }
  0x2d   : > { %2534 = vmatmul.mubr.bf16.vlgmr.msra.gmra.mxu0 %v2146_v42  ;;  %v627_v32 = vrot.slane %v625_v25, 5  ;;  %v279_v25 = vld [vmem:[%s2973_s22 + $0x2c] sm:$0x1] }
  0x2e   : > { %2558 = vmatmul.mubr.bf16.vlgmr.msra.gmra.mxu1 %v2158_v44  ;;  %2566 = vmatpush3.bf16.msra.mxu0 %v2795_v33  ;;  %v2213_v33 = vcombine.low %v2096_v27, %v3103_v28  ;;  %v614_v42 = vsel %vm3097_vm2, %v609_v6, %v613_v29  ;;  %v665_v6 = vrot.slane %v664_v50, 4  ;;  %v3156_v29 = vld [vmem:[%s2973_s22 + $0x40] sm:$0xf]  ;;  %v681_v39 = vshll.u32 %v279_v25, 16  ;;  %v2818_v25 = vld [vmem:[%s3454_s1 + $0x138] sm:$0xff]  }
  0x2f   : > { %2590 = vmatpush3.bf16.msra.mxu1 %v2796_v35  ;;  %2567 = vmatprep.subr.bf16.mxu0 %v2797_v53  ;;  %v637_v35 = vrot.slane %v636_v14, 4  ;;  %v3121_v44 = vsel %vm3097_vm2, %v623_v11, %v627_v32  ;;  %v1209_v11 = vshll.u32 %v3103_v28, 16  ;;  %v688_v14 = vrot.slane %v686_v51, 4  ;;  %v281_v32 = vld [vmem:[%s2973_s22 + $0x3c] sm:$0x1]  ;;  %v2815_v51 = vld [vmem:[%s3454_s1 + $0xc0] sm:$0xff]  }
  0x30   : > { %2591 = vmatprep.subr.bf16.mxu1 %v2798_v54  ;;  %2537 = vmatprep.mubr.bf16.mxu0 %v2147_v55  ;;  %v703_v55 = vshll.u32 %v3076_v1, 16  ;;  %v1754_v49 = vshrl.u32 %v3156_v29, 16  ;;  %v1757_v50 = vshll.u32 %v3156_v29, 16  ;;  %v2300_v31 = vcombine.low %v3076_v1, %v3156_v29 }
  0x31   : > { %2561 = vmatprep.mubr.bf16.mxu1 %v2159_v62  ;;  %v1195_v62 = vshll.u32 %v2096_v27, 16 }
  0x32   : > { %2568 = vmatpush3.bf16.msra.mxu0 %v2797_v53  ;;  %v700_v53 = vshrl.u32 %v3076_v1, 16 }
  0x33   : > { %2592 = vmatpush3.bf16.msra.mxu1 %v2798_v54  ;;  %2569 = vmatprep.subr.bf16.mxu0 %v2799_v61  ;;  %v2185_v54 = vcombine.low %v614_v42, %v3121_v44  ;;  %v3152_v21 = vrot.slane %v1195_v62, 5  ;;  %v282_v42 = vld [vmem:[%s2973_s22 + $0x44] sm:$0x1]  ;;  %v1756_v62 = vrot.slane %v1754_v49, 4 }
  0x34   : > { %2593 = vmatprep.subr.bf16.mxu1 %v2800_v5  ;;  %v702_v34 = vrot.slane %v700_v53, 4 }
  0x35   : > { %2538 = vmatmul.mubr.bf16.gmra.mxu0 %v2148_v8  ;;  %v2812_v8 = vld [vmem:[%s3454_s1 + $0x88] sm:$0xff]  }
  0x36   : > { %2570 = vmatpush3.bf16.msra.mxu0 %v2799_v61  ;;  %2562 = vmatmul.mubr.bf16.gmra.mxu1 %v2160_v10  ;;  %v1192_v61 = vshrl.u32 %v2096_v27, 16  ;;  %v1206_v10 = vshrl.u32 %v3103_v28, 16  ;;  %v667_v27 = vshll.u32 %v278_v17, 16  ;;  %v3186_v17 = vrot.slane %v1209_v11, 5 }
  0x37   : > { %2594 = vmatpush3.bf16.msra.mxu1 %v2800_v5  ;;  %2571 = vmatprep.subr.bf16.mxu0 %v2801_v7  ;;  %v674_v5 = vrot.slane %v672_v38, 4 }
  0x38   : > { %2595 = vmatprep.subr.bf16.mxu1 %v2802_v9  ;;  %2605 = vmatprep.mubr.bf16.mxu1 %v2213_v33  ;;  %v3150_v20 = vrot.slane %v1192_v61, 4  ;;  %v691_v33 = vrot.slane %v689_v52, 5  ;;  %v669_v38 = vrot.slane %v667_v27, 5  ;;  %v3174_v52 = vsel %vm3097_vm2, %v3107_v36, %v655_v23 }
  0x39   : > { %2581 = vmatprep.mubr.bf16.mxu0 %v2185_v54  ;;  %v683_v36 = vrot.slane %v681_v39, 5  ;;  %v1234_v23 = vshrl.u32 %v3184_v2, 16  ;;  %v1763_v27 = vshll.u32 %v282_v42, 16 }
  0x3a   : > { %2572 = vmatpush3.bf16.msra.mxu0 %v2801_v7  ;;  %v677_v7 = vrot.slane %v675_v41, 5  ;;  %v705_v41 = vrot.slane %v703_v55, 5  ;;  %v3178_v53 = vsel %vm3097_vm2, %v665_v6, %v669_v38  ;;  %v709_v55 = vshll.u32 %v281_v32, 16 }
  0x3b   : > { %2596 = vmatpush3.bf16.msra.mxu1 %v2802_v9  ;;  %2573 = vmatprep.subr.bf16.mxu0 %v2803_v37  ;;  %v3142_v9 = vsel %vm3097_vm2, %v637_v35, %v641_v60  ;;  %v2814_v35 = vld [vmem:[%s3454_s1 + $0x80] sm:$0xff]   ;;  %v692_v60 = vor.u32 %v691_v33, %v688_v14  ;;  %v2819_v14 = vld [vmem:[%s3454_s1 + $0x178] sm:$0xff]   ;;  %v1237_v32 = vshll.u32 %v3184_v2, 16  ;;  %v1765_v38 = vrot.slane %v1763_v27, 5 }
  0x3c   : > { %2597 = vmatprep.subr.bf16.mxu1 %v2804_v40  ;;  %v2353_v19 = vcombine.low %v3121_v44, %v3142_v9  ;;  %v678_v28 = vor.u32 %v677_v7, %v674_v5  ;;  %v706_v54 = vor.u32 %v705_v41, %v702_v34  ;;  %v2186_v39 = vcombine.low %v3142_v9, %v3174_v52 }
  0x3d   : > { %v693_v33 = vrot.slane %v692_v60, 4 }
  0x3e   : > { %2574 = vmatpush3.bf16.msra.mxu0 %v2803_v37  ;;  %v3162_v37 = vrot.slane %v1206_v10, 4  ;;  %v679_v7 = vrot.slane %v678_v28, 4  ;;  %v1759_v10 = vrot.slane %v1757_v50, 5  ;;  %v707_v28 = vrot.slane %v706_v54, 4  ;;  %v2100_v50 = vld [vmem:[%s2973_s22 + $0xb0] sm:$0xf] }
  0x3f   : > { %2598 = vmatpush3.bf16.msra.mxu1 %v2804_v40  ;;  %2575 = vmatprep.subr.bf16.mxu0 %v2810_v56  ;;  %v280_v40 = vld [vmem:[%s2973_s22 + $0x34] sm:$0x1]  ;;  %v2101_v54 = vld [vmem:[%s2973_s22 + $0xb8] sm:$0xf]  ;;  %v1248_v27 = vshrl.u32 %v2100_v50, 16 }
  0x40   : > { %2599 = vmatprep.subr.bf16.mxu1 %v2811_v57  ;;  %v695_v61 = vshll.u32 %v280_v40, 16  ;;  %v1760_v11 = vor.u32 %v1759_v10, %v1756_v62  ;;  %v3205_v41 = vsel %vm3097_vm2, %v679_v7, %v683_v36  ;;  %v2215_v7 = vcombine.low %v2100_v50, %v2101_v54  ;;  %v2823_v10 = vld [vmem:[%s3454_s1 + $0x168] sm:$0xff]  }
  0x42   : > { %2576 = vmatpush3.bf16.msra.mxu0 %v2810_v56  ;;  %v2098_v56 = vld [vmem:[%s2973_s22 + $0xa0] sm:$0xf]  ;;  %v697_v34 = vrot.slane %v695_v61, 5  ;;  %v1761_v42 = vrot.slane %v1760_v11, 4  ;;  %v1262_v11 = vshrl.u32 %v2101_v54, 16 }
  0x43   : > { %2600 = vmatpush3.bf16.msra.mxu1 %v2811_v57  ;;  %2577 = vmatprep.subr.bf16.mxu0 %v2812_v8  ;;  %v2354_v57 = vcombine.low %v3174_v52, %v3178_v53  ;;  %v1220_v5 = vshrl.u32 %v2098_v56, 16  ;;  %v1223_v6 = vshll.u32 %v2098_v56, 16  ;;  %v2214_v49 = vcombine.low %v2098_v56, %v3184_v2 }
  0x44   : > { %2601 = vmatprep.subr.bf16.mxu1 %v2813_v15  ;;  %v1766_v60 = vsel %vm3097_vm2, %v1761_v42, %v1765_v38  ;;  %v2187_v56 = vcombine.low %v3178_v53, %v3205_v41  ;;  %v3227_v2 = vrot.slane %v1234_v23, 4  ;;  %v3241_v23 = vld [vmem:[%s2973_s22 + $0xc8] sm:$0xf]  ;;  %v2122_v42 = vld [vmem:[%s2973_s22 + $0x9c] sm:$0x1] }
  0x45   : > { %v3198_v40 = vrot.slane %v1220_v5, 4  ;;  %v3214_v61 = vrot.slane %v1223_v6, 5  ;;  %v2822_v5 = vld [vmem:[%s3454_s1 + $0x128] sm:$0xff]   ;;  %v3238_v6 = vld [vmem:[%s2973_s22 + $0xc0] sm:$0xf] }
  0x46   : > { %2578 = vmatpush3.bf16.msra.mxu0 %v2812_v8  ;;  %v711_v8 = vrot.slane %v709_v55, 5  ;;  %v2216_v38 = vcombine.low %v3238_v6, %v3241_v23 }
  0x47   : > { %2602 = vmatpush3.bf16.msra.mxu1 %v2813_v15  ;;  %2579 = vmatprep.subr.bf16.mxu0 %v2814_v35  ;;  %v2820_v15 = vld [vmem:[%s3454_s1 + $0x130] sm:$0xff]  }
  0x48   : > { %2603 = vmatprep.subr.bf16.mxu1 %v2815_v51  ;;  %v712_v55 = vsel %vm3097_vm2, %v707_v28, %v711_v8  ;;  %v1251_v28 = vshll.u32 %v2100_v50, 16 }
  0x49   : > { %v3225_v62 = vcombine.low %v712_v55, %v1766_v60  ;;  %v1264_v60 = vrot.slane %v1262_v11, 4 }
  0x4a   : > { %2580 = vmatpush3.bf16.msra.mxu0 %v2814_v35  ;;  %v2821_v35 = vld [vmem:[%s3454_s1 + $0x170] sm:$0xff]  }
  0x4b   : > { %2604 = vmatpush3.bf16.msra.mxu1 %v2815_v51  ;;  %2613 = vmatprep.subr.bf16.mxu0 %v2818_v25  ;;  %v3223_v51 = vsel %vm3097_vm2, %v693_v33, %v697_v34  ;;  %v1212_v33 = vor.u32 %v3186_v17, %v3162_v37  ;;  %v1265_v34 = vshll.u32 %v2101_v54, 16  ;;  %v1250_v37 = vrot.slane %v1248_v27, 4  ;;  %v2829_v27 = vld [vmem:[%s3454_s1 + $0x158] sm:$0xff]  }
  0x4c   : > { %2637 = vmatprep.subr.bf16.mxu1 %v2819_v14  ;;  %v2355_v36 = vcombine.low %v3205_v41, %v3223_v51  ;;  %v2188_v8 = vcombine.low %v3223_v51, %v712_v55  ;;  %v1239_v55 = vrot.slane %v1237_v32, 5  ;;  %v1253_v54 = vrot.slane %v1251_v28, 5 }
  0x4d   : > { %2582 = vmatmul.mubr.bf16.vlgmr.msra.gmra.mxu0 %v2186_v39  ;;  %v2121_v39 = vld [vmem:[%s2973_s22 + $0x94] sm:$0x1]  ;;  %v1213_v17 = vrot.slane %v1212_v33, 4  ;;  %v1279_v32 = vshll.u32 %v3238_v6, 16 }
  0x4e   : > { %2606 = vmatmul.mubr.bf16.vlgmr.msra.gmra.mxu1 %v2214_v49  ;;  %2614 = vmatpush3.bf16.msra.mxu0 %v2818_v25  ;;  %v1198_v25 = vor.u32 %v3152_v21, %v3150_v20  ;;  %v2827_v20 = vld [vmem:[%s3454_s1 + $0x160] sm:$0xff]   ;;  %v1201_v50 = vshll.u32 %v2121_v39, 16 }
  0x4f   : > { %2638 = vmatpush3.bf16.msra.mxu1 %v2819_v14  ;;  %2615 = vmatprep.subr.bf16.mxu0 %v2820_v15  ;;  %v2826_v14 = vld [vmem:[%s3454_s1 + $0x120] sm:$0xff]  }
  0x50   : > { %2639 = vmatprep.subr.bf16.mxu1 %v2821_v35  ;;  %2585 = vmatprep.mubr.bf16.mxu0 %v2187_v56  ;;  %v2836_v21 = vld [vmem:[%s2973_s22 + $0xd8] ss:$8 sps:$4 sm:$0xff]   ;;  %v1199_v49 = vrot.slane %v1198_v25, 4  ;;  %v1267_v56 = vrot.slane %v1265_v34, 5  ;;  %v1276_v25 = vshrl.u32 %v3238_v6, 16  ;;  %v1290_v6 = vshrl.u32 %v3241_v23, 16 }
  0x51   : > { %2609 = vmatprep.mubr.bf16.mxu1 %v2215_v7  ;;  %v1203_v7 = vrot.slane %v1201_v50, 5  ;;  %v2830_v34 = vld [vmem:[%s3454_s1 + $0x110] sm:$0xff]  }
  0x52   : > { %2616 = vmatpush3.bf16.msra.mxu0 %v2820_v15  ;;  %v1215_v15 = vshll.u32 %v2122_v42, 16  ;;  %v1278_v50 = vrot.slane %v1276_v25, 4 }
  0x53   : > { %2640 = vmatpush3.bf16.msra.mxu1 %v2821_v35  ;;  %2617 = vmatprep.subr.bf16.mxu0 %v2822_v5  ;;  %v2828_v35 = vld [vmem:[%s3454_s1 + $0x118] sm:$0xff]  }
  0x54   : > { %2641 = vmatprep.subr.bf16.mxu1 %v2823_v10  ;;  %v1217_v28 = vrot.slane %v1215_v15, 5  ;;  %v2125_v15 = vld [vmem:[%s2973_s22 + $0xb4] sm:$0x1] }
  0x55   : > { %2586 = vmatmul.mubr.bf16.gmra.mxu0 %v2188_v8  ;;  %v2123_v8 = vld [vmem:[%s2973_s22 + $0xa4] sm:$0x1] }
  0x56   : > { %2618 = vmatpush3.bf16.msra.mxu0 %v2822_v5  ;;  %2610 = vmatmul.mubr.bf16.gmra.mxu1 %v2216_v38  ;;  %v1204_v5 = vsel %vm3097_vm2, %v1199_v49, %v1203_v7  ;;  %v1218_v11 = vsel %vm3097_vm2, %v1213_v17, %v1217_v28  ;;  %v1293_v38 = vshll.u32 %v3241_v23, 16  ;;  %v1229_v39 = vshll.u32 %v2123_v8, 16  ;;  %v2832_v23 = vld [vmem:[%s3454_s1 + $0x108] sm:$0xff]   ;;  %v2126_v7 = vld [vmem:[%s2973_s22 + $0xbc] sm:$0x1] }
  0x57   : > { %2642 = vmatpush3.bf16.msra.mxu1 %v2823_v10  ;;  %2619 = vmatprep.subr.bf16.mxu0 %v2826_v14  ;;  %v2124_v10 = vld [vmem:[%s2973_s22 + $0xac] sm:$0x1]  ;;  %v2269_v33 = vcombine.low %v1204_v5, %v1218_v11  ;;  %v1254_v49 = vor.u32 %v1253_v54, %v1250_v37  ;;  %v1281_v17 = vrot.slane %v1279_v32, 5  ;;  %v1292_v28 = vrot.slane %v1290_v6, 4  ;;  %v2835_v32 = vld [vmem:[%s3454_s1 + $0x140] sm:$0xff]  }
  0x58   : > { %2643 = vmatprep.subr.bf16.mxu1 %v2827_v20  ;;  %2629 = vmatprep.mubr.bf16.mxu0 %v2836_v21  ;;  %v2831_v21 = vld [vmem:[%s3454_s1 + $0x150] sm:$0xff]   ;;  %v1243_v42 = vshll.u32 %v2124_v10, 16  ;;  %v1295_v5 = vrot.slane %v1293_v38, 5  ;;  %v1231_v37 = vrot.slane %v1229_v39, 5  ;;  %v1271_v8 = vshll.u32 %v2126_v7, 16 }
  0x59   : > { %2653 = vmatprep.mubr.bf16.mxu1 %v2269_v33  ;;  %v1255_v25 = vrot.slane %v1254_v49, 4  ;;  %v2127_v11 = vld [vmem:[%s2973_s22 + $0xc4] sm:$0x1]  ;;  %v1282_v33 = vor.u32 %v1281_v17, %v1278_v50  ;;  %v2837_v39 = vld [vmem:[%s2973_s22 + $0xe8] ss:$8 sps:$4 sm:$0xff]   ;;  %v2839_v49 = vld [vmem:[%s3454_s1 + $0x1f8] sm:$0xff]  }
  0x5a   : > { %2620 = vmatpush3.bf16.msra.mxu0 %v2826_v14  ;;  %v1226_v14 = vor.u32 %v3214_v61, %v3198_v40  ;;  %v2833_v40 = vld [vmem:[%s3454_s1 + $0x148] sm:$0xff]   ;;  %v1296_v6 = vor.u32 %v1295_v5, %v1292_v28  ;;  %v2840_v17 = vld [vmem:[%s3454_s1 + $0x1b0] sm:$0xff]  }
  0x5b   : > { %2644 = vmatpush3.bf16.msra.mxu1 %v2827_v20  ;;  %2621 = vmatprep.subr.bf16.mxu0 %v2828_v35  ;;  %v1240_v20 = vor.u32 %v1239_v55, %v3227_v2  ;;  %v1268_v2 = vor.u32 %v1267_v56, %v1264_v60  ;;  %v2834_v55 = vld [vmem:[%s3454_s1 + $0x100] sm:$0xff]   ;;  %v2128_v60 = vld [vmem:[%s2973_s22 + $0xcc] sm:$0x1]  ;;  %v2838_v56 = vld [vmem:[%s3454_s1 + $0x1b8] sm:$0xff]   ;;  %v1283_v28 = vrot.slane %v1282_v33, 4 }
  0x5c   : > { %2645 = vmatprep.subr.bf16.mxu1 %v2829_v27  ;;  %v1227_v61 = vrot.slane %v1226_v14, 4  ;;  %v1273_v14 = vrot.slane %v1271_v8, 5  ;;  %v1297_v5 = vrot.slane %v1296_v6, 4  ;;  %v2846_v8 = vld [vmem:[%s3454_s1 + $0x1a0] sm:$0xff]   ;;  %v2862_v33 = vld [vmem:[%s3454_s1 + $0x228] sm:$0xff]  }
  0x5d   : > { %v1241_v54 = vrot.slane %v1240_v20, 4  ;;  %v1269_v10 = vrot.slane %v1268_v2, 4  ;;  %v1285_v20 = vshll.u32 %v2127_v11, 16  ;;  %v2842_v2 = vld [vmem:[%s2973_s22 + $0xf8] ss:$8 sps:$4 sm:$0xff]  }
  0x5e   : > { %2622 = vmatpush3.bf16.msra.mxu0 %v2828_v35  ;;  %v1245_v35 = vrot.slane %v1243_v42, 5  ;;  %v1299_v42 = vshll.u32 %v2128_v60, 16  ;;  %v2848_v11 = vld [vmem:[%s3454_s1 + $0x198] sm:$0xff]   ;;  %v2112_v6 = vld [vmem:[%s2973_s22 + $0x88] sm:$0xf] }
  0x5f   : > { %2646 = vmatpush3.bf16.msra.mxu1 %v2829_v27  ;;  %2623 = vmatprep.subr.bf16.mxu0 %v2830_v34  ;;  %v1257_v27 = vshll.u32 %v2125_v15, 16  ;;  %v1274_v7 = vsel %vm3097_vm2, %v1269_v10, %v1273_v14  ;;  %v2849_v60 = vld [vmem:[%s3454_s1 + $0x1d8] sm:$0xff]   ;;  %v2851_v10 = vld [vmem:[%s3454_s1 + $0x1d0] sm:$0xff]   ;;  %v2328_v30 = vcombine.low %v3070_v63, %v2112_v6 }
  0x60   : > { %2647 = vmatprep.subr.bf16.mxu1 %v2831_v21  ;;  %v1246_v38 = vsel %vm3097_vm2, %v1241_v54, %v1245_v35 }
  0x62   : > { %2624 = vmatpush3.bf16.msra.mxu0 %v2830_v34  ;;  %v1232_v34 = vsel %vm3097_vm2, %v1227_v61, %v1231_v37  ;;  %v1301_v61 = vrot.slane %v1299_v42, 5  ;;  %v2844_v37 = vld [vmem:[%s3454_s1 + $0x1a8] sm:$0xff]  }
  0x63   : > { %2648 = vmatpush3.bf16.msra.mxu1 %v2831_v21  ;;  %2625 = vmatprep.subr.bf16.mxu0 %v2832_v23  ;;  %v1259_v21 = vrot.slane %v1257_v27, 5  ;;  %v2270_v50 = vcombine.low %v1232_v34, %v1246_v38 }
  0x64   : > { %2649 = vmatprep.subr.bf16.mxu1 %v2833_v40  ;;  %v1302_v35 = vsel %vm3097_vm2, %v1297_v5, %v1301_v61 }
  0x65   : > { %v1260_v15 = vsel %vm3097_vm2, %v1255_v25, %v1259_v21  ;;  %v2845_v25 = vld [vmem:[%s3454_s1 + $0x1e8] sm:$0xff]  }
  0x66   : > { %2626 = vmatpush3.bf16.msra.mxu0 %v2832_v23  ;;  %v2841_v23 = vld [vmem:[%s3454_s1 + $0x1f0] sm:$0xff]  }
  0x67   : > { %2650 = vmatpush3.bf16.msra.mxu1 %v2833_v40  ;;  %2627 = vmatprep.subr.bf16.mxu0 %v2834_v55  ;;  %v1287_v40 = vrot.slane %v1285_v20, 5 }
  0x68   : > { %2651 = vmatprep.subr.bf16.mxu1 %v2835_v32 }
  0x69   : > { %v1288_v54 = vsel %vm3097_vm2, %v1283_v28, %v1287_v40 }
  0x6a   : > { %2628 = vmatpush3.bf16.msra.mxu0 %v2834_v55  ;;  %v2271_v55 = vcombine.low %v1260_v15, %v1274_v7  ;;  %v2272_v27 = vcombine.low %v1288_v54, %v1302_v35 }
  0x6b   : > { %2652 = vmatpush3.bf16.msra.mxu1 %v2835_v32  ;;  %2661 = vmatprep.subr.bf16.mxu0 %v2838_v56  ;;  %v2843_v32 = vld [vmem:[%s2973_s22 + $0x108] ss:$8 sps:$4 sm:$0xff]  }
  0x6c   : > { %2685 = vmatprep.subr.bf16.mxu1 %v2839_v49 }
  0x6d   : > { %2630 = vmatmul.mubr.bf16.vlgmr.msra.gmra.mxu0 %v2837_v39 }
  0x6e   : > { %2654 = vmatmul.mubr.bf16.vlgmr.msra.gmra.mxu1 %v2270_v50  ;;  %2662 = vmatpush3.bf16.msra.mxu0 %v2838_v56  ;;  %v2850_v56 = vld [vmem:[%s3454_s1 + $0x190] sm:$0xff]  }
  0x6f   : > { %2686 = vmatpush3.bf16.msra.mxu1 %v2839_v49  ;;  %2663 = vmatprep.subr.bf16.mxu0 %v2840_v17 }
  0x70   : > { %2687 = vmatprep.subr.bf16.mxu1 %v2841_v23  ;;  %2633 = vmatprep.mubr.bf16.mxu0 %v2842_v2 }
  0x71   : > { %2657 = vmatprep.mubr.bf16.mxu1 %v2271_v55 }
  0x72   : > { %2664 = vmatpush3.bf16.msra.mxu0 %v2840_v17 }
  0x73   : > { %2688 = vmatpush3.bf16.msra.mxu1 %v2841_v23  ;;  %2665 = vmatprep.subr.bf16.mxu0 %v2844_v37 }
  0x74   : > { %2689 = vmatprep.subr.bf16.mxu1 %v2845_v25 }
  0x75   : > { %2634 = vmatmul.mubr.bf16.gmra.mxu0 %v2843_v32 }
  0x76   : > { %2666 = vmatpush3.bf16.msra.mxu0 %v2844_v37  ;;  %2658 = vmatmul.mubr.bf16.gmra.mxu1 %v2272_v27 }
  0x77   : > { %2690 = vmatpush3.bf16.msra.mxu1 %v2845_v25  ;;  %2667 = vmatprep.subr.bf16.mxu0 %v2846_v8 }
  0x78   : > { %2691 = vmatprep.subr.bf16.mxu1 %v2847_v26  ;;  %2677 = vmatprep.mubr.bf16.mxu0 %v2297_v24  ;;  %v2859_v24 = vld [vmem:[%s3454_s1 + $0x230] sm:$0xff]  }
  0x79   : > { %2701 = vmatprep.mubr.bf16.mxu1 %v2325_v16  ;;  %v2854_v16 = vld [vmem:[%s3454_s1 + $0x180] sm:$0xff]  }
  0x7a   : > { %2668 = vmatpush3.bf16.msra.mxu0 %v2846_v8 }
  0x7b   : > { %2692 = vmatpush3.bf16.msra.mxu1 %v2847_v26  ;;  %2669 = vmatprep.subr.bf16.mxu0 %v2848_v11 }
  0x7c   : > { %2693 = vmatprep.subr.bf16.mxu1 %v2849_v60 }
  0x7e   : > { %2670 = vmatpush3.bf16.msra.mxu0 %v2848_v11 }
  0x7f   : > { %2694 = vmatpush3.bf16.msra.mxu1 %v2849_v60  ;;  %2671 = vmatprep.subr.bf16.mxu0 %v2850_v56 }
  0x80   : > { %2695 = vmatprep.subr.bf16.mxu1 %v2851_v10 }
  0x82   : > { %2672 = vmatpush3.bf16.msra.mxu0 %v2850_v56 }
  0x83   : > { %2696 = vmatpush3.bf16.msra.mxu1 %v2851_v10  ;;  %2673 = vmatprep.subr.bf16.mxu0 %v2852_v12 }
  0x84   : > { %2697 = vmatprep.subr.bf16.mxu1 %v2853_v13 }
  0x86   : > { %2674 = vmatpush3.bf16.msra.mxu0 %v2852_v12 }
  0x87   : > { %2698 = vmatpush3.bf16.msra.mxu1 %v2853_v13  ;;  %2675 = vmatprep.subr.bf16.mxu0 %v2854_v16 }
  0x88   : > { %2699 = vmatprep.subr.bf16.mxu1 %v2855_v18 }
  0x8a   : > { %2676 = vmatpush3.bf16.msra.mxu0 %v2854_v16 }
  0x8b   : > { %2700 = vmatpush3.bf16.msra.mxu1 %v2855_v18  ;;  %2709 = vmatprep.subr.bf16.mxu0 %v2858_v22 }
  0x8c   : > { %2733 = vmatprep.subr.bf16.mxu1 %v2858_v22 }
  0x8d   : > { %2678 = vmatmul.mubr.bf16.vlgmr.msra.gmra.mxu0 %v2298_v59 }
  0x8e   : > { %2702 = vmatmul.mubr.bf16.vlgmr.msra.gmra.mxu1 %v2326_v46  ;;  %2710 = vmatpush3.bf16.msra.mxu0 %v2858_v22  ;;  %v2867_v46 = vld [vmem:[%s3454_s1 + $0x210] sm:$0xff]  }
  0x8f   : > { %2741 = vmatpush3.bf16.msra.mxu1 %v2858_v22  ;;  %2711 = vmatprep.subr.bf16.mxu0 %v2859_v24 }
  0x90   : > { %2734 = vmatprep.subr.bf16.mxu1 %v2859_v24  ;;  %2681 = vmatprep.mubr.bf16.mxu0 %v2299_v3 }
  0x91   : > { %2705 = vmatprep.mubr.bf16.mxu1 %v2327_v4 }
  0x92   : > { %2712 = vmatpush3.bf16.msra.mxu0 %v2859_v24 }
  0x93   : > { %2742 = vmatpush3.bf16.msra.mxu1 %v2859_v24  ;;  %2713 = vmatprep.subr.bf16.mxu0 %v2862_v33 }
  0x94   : > { %2735 = vmatprep.subr.bf16.mxu1 %v2862_v33 }
  0x95   : > { %2682 = vmatmul.mubr.bf16.gmra.mxu0 %v2300_v31 }
  0x96   : > { %2714 = vmatpush3.bf16.msra.mxu0 %v2862_v33  ;;  %2706 = vmatmul.mubr.bf16.gmra.mxu1 %v2328_v30 }
  0x97   : > { %2743 = vmatpush3.bf16.msra.mxu1 %v2862_v33  ;;  %2715 = vmatprep.subr.bf16.mxu0 %v2865_v43 }
  0x98   : > { %2736 = vmatprep.subr.bf16.mxu1 %v2865_v43  ;;  %2725 = vmatprep.mubr.bf16.mxu0 %v2353_v19 }
  0x99   : > { %2729 = vmatprep.mubr.bf16.mxu1 %v2355_v36 }
  0x9a   : > { %2716 = vmatpush3.bf16.msra.mxu0 %v2865_v43 }
  0x9b   : > { %2744 = vmatpush3.bf16.msra.mxu1 %v2865_v43  ;;  %2717 = vmatprep.subr.bf16.mxu0 %v2866_v45 }
  0x9c   : > { %2737 = vmatprep.subr.bf16.mxu1 %v2866_v45 }
  0x9e   : > { %2718 = vmatpush3.bf16.msra.mxu0 %v2866_v45 }
  0x9f   : > { %2745 = vmatpush3.bf16.msra.mxu1 %v2866_v45  ;;  %2719 = vmatprep.subr.bf16.mxu0 %v2867_v46 }
  0xa0   : > { %2738 = vmatprep.subr.bf16.mxu1 %v2867_v46 }
  0xa2   : > { %2720 = vmatpush3.bf16.msra.mxu0 %v2867_v46 }
  0xa3   : > { %2746 = vmatpush3.bf16.msra.mxu1 %v2867_v46  ;;  %2721 = vmatprep.subr.bf16.mxu0 %v2868_v47 }
  0xa4   : > { %2739 = vmatprep.subr.bf16.mxu1 %v2868_v47 }
  0xa6   : > { %2722 = vmatpush3.bf16.msra.mxu0 %v2868_v47 }
  0xa7   : > { %2747 = vmatpush3.bf16.msra.mxu1 %v2868_v47  ;;  %2723 = vmatprep.subr.bf16.mxu0 %v2869_v48 }
  0xa8   : > { %2740 = vmatprep.subr.bf16.mxu1 %v2869_v48 }
  0xaa   : > { %2724 = vmatpush3.bf16.msra.mxu0 %v2869_v48 }
  0xab   : > { %2748 = vmatpush3.bf16.msra.mxu1 %v2869_v48 }
  0xad   : > { %2726 = vmatmul.mubr.bf16.vlgmr.msra.gmra.mxu0 %v2354_v57 }
  0xae   : > { %2730 = vmatmul.mubr.bf16.vlgmr.msra.gmra.mxu1 %v3225_v62 }
  0xed   : > { %v2535_v58 = vpop.f32.mrf.mxu0 }
  0xee   : > { %v2559_v63 = vpop.f32.mrf.mxu1 }
  0xef   : > { %v430_v59 = vpop.f32.mrf.mxu0  ;;  %v576_v22 = vadd.f32 %v2559_v63, %v2535_v58 }
  0xf0   : > { %v567_v1 = vpop.f32.mrf.mxu1 }
  0xf1   : > { %v2536_v0 = vpop.f32.mrf.mxu0  ;;  %v568_v31 = vadd.f32 %v567_v1, %v430_v59 }
  0xf2   : > { %v2560_v44 = vpop.f32.mrf.mxu1 }
  0xf3   : > { %v433_v3 = vpop.f32.mrf.mxu0  ;;  %v579_v46 = vadd.f32 %v2560_v44, %v2536_v0 }
  0xf4   : > { %v570_v19 = vpop.f32.mrf.mxu1 }
  0xf5   : > { %v2539_v4 = vpop.f32.mrf.mxu0  ;;  %v571_v63 = vadd.f32 %v570_v19, %v433_v3 }
  0xf6   : > { %v2563_v29 = vpop.f32.mrf.mxu1 }
  0xf7   : > { %v446_v9 = vpop.f32.mrf.mxu0  ;;  %v592_v33 = vadd.f32 %v2563_v29, %v2539_v4 }
  0xf8   : > { %v583_v51 = vpop.f32.mrf.mxu1 }
  0xf9   : > { %v2540_v41 = vpop.f32.mrf.mxu0  ;;  %v584_v43 = vadd.f32 %v583_v51, %v446_v9 }
  0xfa   : > { %v2564_v38 = vpop.f32.mrf.mxu1 }
  0xfb   : > { %v449_v36 = vpop.f32.mrf.mxu0 }
  0xfc   : > { %v586_v53 = vpop.f32.mrf.mxu1 }
  0xfd   : > { %v587_v1 = vadd.f32 %v586_v53, %v449_v36 }
 0x10d   : > { %v2583_v34 = vpop.f32.mrf.mxu0 }
 0x10e   : > { %v2607_v57 = vpop.f32.mrf.mxu1  ;;  %v861_v30 = vadd.f32 %v2583_v34, %v576_v22 }
 0x10f   : > { %v828_v52 = vpop.f32.mrf.mxu0 }
 0x110   : > { %v990_v21 = vpop.f32.mrf.mxu1  ;;  %v859_v47 = vadd.f32 %v828_v52, %v568_v31 }
 0x111   : > { %v2584_v62 = vpop.f32.mrf.mxu0 }
 0x112   : > { %v2608_v39 = vpop.f32.mrf.mxu1  ;;  %v862_v4 = vadd.f32 %v2584_v62, %v579_v46  ;;  %v1021_v34 = vadd.f32 %v990_v21, %v859_v47 }
 0x113   : > { %v831_v14 = vpop.f32.mrf.mxu0 }
 0x114   : > { %v993_v42 = vpop.f32.mrf.mxu1  ;;  %v860_v9 = vadd.f32 %v831_v14, %v571_v63  ;;  %v1024_v52 = vadd.f32 %v2608_v39, %v862_v4 }
 0x115   : > { %v2587_v20 = vpop.f32.mrf.mxu0 }
 0x116   : > { %v2611_v50 = vpop.f32.mrf.mxu1  ;;  %v865_v45 = vadd.f32 %v2587_v20, %v592_v33 }
 0x117   : > { %v844_v49 = vpop.f32.mrf.mxu0 }
 0x118   : > { %v1006_v23 = vpop.f32.mrf.mxu1  ;;  %v1027_v59 = vadd.f32 %v2611_v50, %v865_v45 }
 0x119   : > { %v2588_v17 = vpop.f32.mrf.mxu0 }
 0x11a   : > { %v2612_v7 = vpop.f32.mrf.mxu1 }
 0x11b   : > { %v847_v15 = vpop.f32.mrf.mxu0 }
 0x11c   : > { %v1009_v5 = vpop.f32.mrf.mxu1  ;;  %v864_v33 = vadd.f32 %v847_v15, %v587_v1 }
 0x12d   : > { %v2631_v28 = vpop.f32.mrf.mxu0 }
 0x12e   : > { %v2655_v61 = vpop.f32.mrf.mxu1 }
 0x12f   : > { %v1152_v40 = vpop.f32.mrf.mxu0 }
 0x130   : > { %v1418_v55 = vpop.f32.mrf.mxu1  ;;  %v1183_v31 = vadd.f32 %v1152_v40, %v1021_v34 }
 0x131   : > { %v2632_v2 = vpop.f32.mrf.mxu0 }
 0x132   : > { %v2656_v54 = vpop.f32.mrf.mxu1  ;;  %v1186_v19 = vadd.f32 %v2632_v2, %v1024_v52  ;;  %v1449_v50 = vadd.f32 %v1418_v55, %v1183_v31 }
 0x133   : > { %v1155_v37 = vpop.f32.mrf.mxu0 }
 0x134   : > { %v3419_v25 = vpop.f32.mrf.mxu1 }
 0x135   : > { %v2635_v35 = vpop.f32.mrf.mxu0  ;;  %3460 = vst [vmem:[#allocation2_spill] sm:$0xff] %v3419_v25  ;;  %v595_v25 = vadd.f32 %v2564_v38, %v2540_v41 }
 0x136   : > { %v2659_v32 = vpop.f32.mrf.mxu1  ;;  %v1189_v0 = vadd.f32 %v2635_v35, %v1027_v59  ;;  %v1452_v35 = vadd.f32 %v2656_v54, %v1186_v19 }
 0x137   : > { %v1168_v27 = vpop.f32.mrf.mxu0  ;;  %v866_v22 = vadd.f32 %v2588_v17, %v595_v25 }
 0x138   : > { %v1434_v8 = vpop.f32.mrf.mxu1  ;;  %v1455_v62 = vadd.f32 %v2659_v32, %v1189_v0 }
 0x139   : > { %v2636_v26 = vpop.f32.mrf.mxu0  ;;  %v1028_v41 = vadd.f32 %v2612_v7, %v866_v22 }
 0x13a   : > { %v2660_v11 = vpop.f32.mrf.mxu1 }
 0x13b   : > { %v1171_v60 = vpop.f32.mrf.mxu0  ;;  %v1190_v36 = vadd.f32 %v2636_v26, %v1028_v41 }
 0x13c   : > { %v1437_v10 = vpop.f32.mrf.mxu1 }
 0x13d   : > { %v1456_v40 = vadd.f32 %v2660_v11, %v1190_v36 }
 0x14d   : > { %v2679_v56 = vpop.f32.mrf.mxu0 }
 0x14e   : > { %v2703_v12 = vpop.f32.mrf.mxu1 }
 0x14f   : > { %v1566_v13 = vpop.f32.mrf.mxu0 }
 0x150   : > { %v3421_v16 = vpop.f32.mrf.mxu1  ;;  %v1597_v39 = vadd.f32 %v1566_v13, %v1449_v50 }
 0x151   : > { %3461 = vst [vmem:[#allocation3_spill] sm:$0xff] %v3421_v16  ;;  %v2680_v18 = vpop.f32.mrf.mxu0  ;;  %v863_v16 = vadd.f32 %v844_v49, %v584_v43  ;;  %v1022_v49 = vadd.f32 %v993_v42, %v860_v9  ;;  %v3464_v42 = vld [vmem:[#allocation2_spill] sm:$0xff] }
 0x152   : > { %v3423_v24 = vpop.f32.mrf.mxu1 }
 0x153   : > { %3462 = vst [vmem:[#allocation4_spill] sm:$0xff] %v3423_v24  ;;  %v1569_v6 = vpop.f32.mrf.mxu0  ;;  %v1023_v24 = vadd.f32 %v2607_v57, %v861_v30  ;;  %v1025_v20 = vadd.f32 %v1006_v23, %v863_v16  ;;  %v1026_v57 = vadd.f32 %v1009_v5, %v864_v33  ;;  %v1184_v21 = vadd.f32 %v1155_v37, %v1022_v49 }
 0x154   : > { %v3425_v48 = vpop.f32.mrf.mxu1  ;;  %v1600_v5 = vadd.f32 %v2680_v18, %v1452_v35 }
 0x155   : > { %3463 = vst [vmem:[#allocation5_spill] sm:$0xff] %v3425_v48  ;;  %v2683_v58 = vpop.f32.mrf.mxu0  ;;  %v1185_v51 = vadd.f32 %v2631_v28, %v1023_v24  ;;  %v1187_v38 = vadd.f32 %v1168_v27, %v1025_v20  ;;  %v1188_v15 = vadd.f32 %v1171_v60, %v1026_v57 }
 0x156   : > { %v2707_v29 = vpop.f32.mrf.mxu1  ;;  %v1603_v28 = vadd.f32 %v2683_v58, %v1455_v62  ;;  %v2366_v58 = vld [vmem:[%s3456_s3] ss:$0 sm:$0xff] }
 0x157   : > { %v1582_v44 = vpop.f32.mrf.mxu0  ;;  %v1451_v3 = vadd.f32 %v2655_v61, %v1185_v51  ;;  %v1453_v23 = vadd.f32 %v1434_v8, %v1187_v38  ;;  %v1450_v61 = vadd.f32 %v3464_v42, %v1184_v21  ;;  %v1454_v27 = vadd.f32 %v1437_v10, %v1188_v15  ;;  %v2365_v8 = vld [vmem:[%s3455_s2] ss:$0 sm:$0xff] }
 0x158   : > { %v1730_v48 = vpop.f32.mrf.mxu1  ;;  %v1751_v26 = vadd.f32 %v2707_v29, %v1603_v28  ;;  %v3465_v60 = vld [vmem:[#allocation3_spill] sm:$0xff] }
 0x159   : > { %v2684_v53 = vpop.f32.mrf.mxu0  ;;  %v1599_v14 = vadd.f32 %v2679_v56, %v1451_v3  ;;  %v1601_v7 = vadd.f32 %v1582_v44, %v1453_v23  ;;  %v1745_v54 = vadd.f32 %v3465_v60, %v1597_v39  ;;  %v1598_v56 = vadd.f32 %v1569_v6, %v1450_v61 }
 0x15a   : > { %v2708_v17 = vpop.f32.mrf.mxu1  ;;  %v1604_v55 = vadd.f32 %v2684_v53, %v1456_v40  ;;  %v3466_v10 = vld [vmem:[#allocation4_spill] sm:$0xff] }
 0x15b   : > { %v1585_v25 = vpop.f32.mrf.mxu0  ;;  %v1747_v2 = vadd.f32 %v2703_v12, %v1599_v14  ;;  %v1749_v16 = vadd.f32 %v1730_v48, %v1601_v7  ;;  %v1748_v30 = vadd.f32 %v3466_v10, %v1600_v5 }
 0x15c   : > { %v1733_v32 = vpop.f32.mrf.mxu1  ;;  %v1602_v12 = vadd.f32 %v1585_v25, %v1454_v27  ;;  %v1752_v47 = vadd.f32 %v2708_v17, %v1604_v55  ;;  %v3467_v29 = vld [vmem:[#allocation5_spill] sm:$0xff] }
 0x15d   : > { %v1746_v1 = vadd.f32 %v3467_v29, %v1598_v56 }
 0x15e   : > { %v1750_v34 = vadd.f32 %v1733_v32, %v1602_v12 }
 0x16d   : > { %v2727_v37 = vpop.f32.mrf.mxu0 }
 0x16e   : > { %v1908_v11 = vadd.f32 %v2727_v37, %v1747_v2  ;;  %v2731_v13 = vpop.f32.mrf.mxu1 }
 0x16f   : > { %v1912_v18 = vadd.f32 %v2731_v13, %v1751_v26  ;;  %v1875_v24 = vpop.f32.mrf.mxu0 }
 0x170   : > { %v1923_v43 = vmul.f32 %v2365_v8, %v1908_v11  ;;  %v1906_v45 = vadd.f32 %v1875_v24, %v1745_v54  ;;  %v1891_v46 = vpop.f32.mrf.mxu1 }
 0x171   : > { %v1927_v6 = vmul.f32 %v2365_v8, %v1912_v18  ;;  %v1910_v63 = vadd.f32 %v1891_v46, %v1749_v16  ;;  %v2728_v4 = vpop.f32.mrf.mxu0 }
 0x172   : > { %v1921_v59 = vmul.f32 %v2365_v8, %v1906_v45  ;;  %v1909_v48 = vadd.f32 %v2728_v4, %v1748_v30  ;;  %v2732_v22 = vpop.f32.mrf.mxu1  ;;  %v1938_v33 = vadd.f32 %v2366_v58, %v1923_v43 }
 0x173   : > { %v1925_v9 = vmul.f32 %v2365_v8, %v1910_v63  ;;  %v1913_v51 = vadd.f32 %v2732_v22, %v1752_v47  ;;  %v1878_v20 = vpop.f32.mrf.mxu0  ;;  %v1942_v31 = vadd.f32 %v2366_v58, %v1927_v6 }
 0x174   : > { %v1924_v0 = vmul.f32 %v2365_v8, %v1909_v48  ;;  %v1907_v44 = vadd.f32 %v1878_v20, %v1746_v1  ;;  %v1894_v52 = vpop.f32.mrf.mxu1  ;;  %v1936_v49 = vadd.f32 %v2366_v58, %v1921_v59  ;;  %v1946_v53 = vmax.f32 %v1938_v33, 0.0 }
 0x175   : > { %v1928_v41 = vmul.f32 %v2365_v8, %v1913_v51  ;;  %v1911_v38 = vadd.f32 %v1894_v52, %v1750_v34  ;;  %v1940_v57 = vadd.f32 %v2366_v58, %v1925_v9  ;;  %v1950_v14 = vmax.f32 %v1942_v31, 0.0 }
 0x176   : > { %v1939_v3 = vadd.f32 %v2366_v58, %v1924_v0  ;;  %v1922_v19 = vmul.f32 %v2365_v8, %v1907_v44  ;;  %v1944_v15 = vmax.f32 %v1936_v49, 0.0 }
 0x177   : > { %v1943_v62 = vadd.f32 %v2366_v58, %v1928_v41  ;;  %v1926_v36 = vmul.f32 %v2365_v8, %v1911_v38  ;;  %v1948_v39 = vmax.f32 %v1940_v57, 0.0 }
 0x178   : > { %v1947_v50 = vmax.f32 %v1939_v3, 0.0  ;;  %v1937_v21 = vadd.f32 %v2366_v58, %v1922_v19 }
 0x179   : > { %v1951_v17 = vmax.f32 %v1943_v62, 0.0  ;;  %v1941_v23 = vadd.f32 %v2366_v58, %v1926_v36 }
 0x17a   : > { %v2394_v28 = vpack.c.bf16 %v1947_v50, %v1946_v53  ;;  %v1945_v35 = vmax.f32 %v1937_v21, 0.0 }
 0x17b   : > { %v2404_v40 = vpack.c.bf16 %v1951_v17, %v1950_v14  ;;  %v1949_v7 = vmax.f32 %v1941_v23, 0.0 }
 0x17c   : > { %2406 = vst [vmem:[%s224_s26 + $0x8] sm:$0xff] %v2394_v28   ;;  %v2389_v25 = vpack.c.bf16 %v1945_v35, %v1944_v15 }
 0x17d   : > { %2408 = vst [vmem:[%s224_s26 + $0x18] sm:$0xff] %v2404_v40   ;;  %v2399_v42 = vpack.c.bf16 %v1949_v7, %v1948_v39 }
 0x17e   : > { %2390 = vst [vmem:[%s224_s26] sm:$0xff] %v2389_v25  }
 0x17f   : > { %2407 = vst [vmem:[%s224_s26 + $0x10] sm:$0xff] %v2399_v42  }
 0x180 PF: > { %s14_s17 = sadd.s32 1, %s2892_s17   ;;  %s3468_s15 = smov %s2888_s16 }
 0x181   : > { %p11_p6 = scmp.ge.s32.totalorder %s14_s17, 4   ;;  %s3469_s16 = smov %s3471_s18 }
 0x183   :  { %13 = sbr.rel (!%p11_p6) target bundleno = 2 (0x2), region = 78 }

</bundles_post_ra>
